<compile_context>
chip_gen: v7x
topology: tpu7x:2x2x1
jax: 0.10.0
libtpu: 0.0.40
codegen_flags: <defaults>
</compile_context>

<pallas_src>
import functools

import jax
import jax.numpy as jnp
from jax.experimental import pallas as pl
from jax.experimental.pallas import tpu as pltpu


LANES = 128        # TPU vreg lane width
TM_MAX = 512       # max rows per output tile (v7x VMEM-safe, still >= 85% of roofline)


def _round_up(x, m):
    return ((x + m - 1) // m) * m


# ----------------------------- Pallas kernel --------------------------------

def _fused_conv_matmul_kernel(x_ref, w_ref, shift_ref, o_ref, *,
                              apply_leaky, negative_slope):
    # x_ref: (TM, K) bf16 im2col patches; w_ref: (K, Npad) bf16 (per-channel scale pre-folded)
    # shift_ref: (1, Npad) f32; o_ref: (TM, Npad) lane-dense output.
    acc = jnp.dot(x_ref[...], w_ref[...], preferred_element_type=jnp.float32)
    y = acc + shift_ref[...]                       # f32 epilogue (v5e has no bf16 VPU)
    if apply_leaky:
        y = jnp.where(y >= 0, y, y * negative_slope)
    o_ref[...] = y.astype(o_ref.dtype)


def fused_conv_matmul(cols, w2d_scaled, shift, *, apply_leaky,
                      negative_slope=0.2, out_dtype=jnp.float32):
    """y = [leaky_relu]( cols @ w2d_scaled + shift ); returns (M, cout) in out_dtype."""
    M, K = cols.shape
    K2, cout = w2d_scaled.shape
    assert K == K2

    # Lane-dense output: pad Cout to a multiple of 128 lanes -> unmasked stores.
    Npad = _round_up(cout, LANES)
    w_pad = jnp.pad(w2d_scaled, ((0, 0), (0, Npad - cout))).astype(jnp.bfloat16)
    shift_pad = jnp.pad(shift.astype(jnp.float32), (0, Npad - cout)).reshape(1, Npad)

    # Row tiling: single block at demo sizes (grid=(1,)); cap tile rows for large inputs so a
    # double-buffered bf16 tile stays well inside v7x's 64 MiB VMEM.
    M16 = _round_up(M, 16)                  # bf16 sublane-packing granularity
    if M16 <= TM_MAX:
        TM, Mp = M16, M16
    else:
        TM = TM_MAX
        Mp = _round_up(M, TM)
    if Mp != M:
        cols = jnp.pad(cols, ((0, Mp - M), (0, 0)))
    cols = cols.astype(jnp.bfloat16)
    grid = (Mp // TM,)

    kernel = functools.partial(_fused_conv_matmul_kernel,
                               apply_leaky=apply_leaky,
                               negative_slope=negative_slope)
    out = pl.pallas_call(
        kernel,
        out_shape=jax.ShapeDtypeStruct((Mp, Npad), out_dtype),
        grid=grid,
        in_specs=[
            pl.BlockSpec((TM, K), lambda i: (i, 0)),    # patch tile (pipelined over M)
            # Constant block index -> Pallas skips re-fetching these across grid steps.
            pl.BlockSpec((K, Npad), lambda i: (0, 0)),  # full (scaled) weight
            pl.BlockSpec((1, Npad), lambda i: (0, 0)),  # per-channel shift
        ],
        out_specs=pl.BlockSpec((TM, Npad), lambda i: (i, 0)),
        compiler_params=pltpu.CompilerParams(
            dimension_semantics=("parallel",),          # v7x: both TCs share the M axis
            vmem_limit_bytes=48 * 1024 * 1024,          # < v7x 64 MiB physical
        ),
    )(cols, w_pad, shift_pad)
    return out[:M, :cout]


# ------------------------------- JAX glue ------------------------------------

def im2col(x_nhwc, kh, kw, stride, pad):
    """Extract conv patches (bf16). Returns ((N*OH*OW, KH*KW*C), (N, OH, OW))."""
    x = jnp.pad(x_nhwc, ((0, 0), (pad, pad), (pad, pad), (0, 0)))
    N, Hp, Wp, C = x.shape
    oh = (Hp - kh) // stride + 1
    ow = (Wp - kw) // stride + 1
    patches = []
    for i in range(kh):
        for j in range(kw):
            stop_i = i + (oh - 1) * stride + 1
            stop_j = j + (ow - 1) * stride + 1
            patches.append(x[:, i:stop_i:stride, j:stop_j:stride, :])
    cols = jnp.concatenate(patches, axis=-1)           # (N, OH, OW, KH*KW*C)
    return cols.reshape(N * oh * ow, kh * kw * C), (N, oh, ow)


def spectral_normalize(weight_oihw, u, eps=1e-12):
    """One power iteration on W.reshape(OC, -1), W / sigma (torch F.normalize semantics)."""
    oc = weight_oihw.shape[0]
    w2d = weight_oihw.reshape(oc, -1)
    v = w2d.T @ u
    v = v / jnp.maximum(jnp.linalg.norm(v), eps)
    u_new = w2d @ v
    u_new = u_new / jnp.maximum(jnp.linalg.norm(u_new), eps)
    sigma = jnp.dot(u_new, w2d @ v)
    return weight_oihw / sigma


def init_params(key, input_channels=1, output_channels=1, ndf=8, n_layers=3):
    combined = input_channels + output_channels
    specs = [dict(cin=combined, cout=ndf, k=4, s=2, p=1, bias=False, bn=False, leaky=True)]
    nf_mult = 1
    for n in range(1, n_layers):
        nf_prev, nf_mult = nf_mult, min(2 ** n, 8)
        specs.append(dict(cin=ndf * nf_prev, cout=ndf * nf_mult, k=4, s=2, p=1,
                          bias=False, bn=True, leaky=True))
    nf_prev, nf_mult = nf_mult, min(2 ** n_layers, 8)
    specs.append(dict(cin=ndf * nf_prev, cout=ndf * nf_mult, k=4, s=1, p=1,
                      bias=False, bn=True, leaky=True))
    specs.append(dict(cin=ndf * nf_mult, cout=1, k=4, s=1, p=1,
                      bias=True, bn=False, leaky=False))

    params = []
    for spec in specs:
        key, kw_, ku_, kb_ = jax.random.split(key, 4)
        fan_in = spec['cin'] * spec['k'] * spec['k']
        w = jax.random.normal(kw_, (spec['cout'], spec['cin'], spec['k'], spec['k']),
                              jnp.float32) / jnp.sqrt(float(fan_in))
        u = jax.random.normal(ku_, (spec['cout'],), jnp.float32)
        u = u / jnp.maximum(jnp.linalg.norm(u), 1e-12)
        w_sn = spectral_normalize(w, u)

        b = (jax.random.normal(kb_, (spec['cout'],), jnp.float32) / jnp.sqrt(float(fan_in))
             if spec['bias'] else jnp.zeros((spec['cout'],), jnp.float32))

        # BatchNorm2d eval with fresh buffers: gamma=1, beta=0, mean=0, var=1, eps=1e-5
        if spec['bn']:
            bn_scale = jnp.full((spec['cout'],), 1.0 / jnp.sqrt(1.0 + 1e-5), jnp.float32)
            bn_shift = jnp.zeros((spec['cout'],), jnp.float32)
        else:
            bn_scale = jnp.ones((spec['cout'],), jnp.float32)
            bn_shift = jnp.zeros((spec['cout'],), jnp.float32)

        # (OC, IC, KH, KW) -> (KH, KW, IC, OC) -> (KH*KW*IC, OC): matches im2col K ordering.
        w2d = jnp.transpose(w_sn, (2, 3, 1, 0)).reshape(-1, spec['cout'])
        # Fold BN scale into the weight columns; fold bias + BN into a single shift.
        w2d_scaled = w2d * bn_scale[None, :]
        shift = bn_scale * b + bn_shift

        params.append(dict(w2d_scaled=w2d_scaled, shift=shift,
                           k=spec['k'], stride=spec['s'], pad=spec['p'],
                           leaky=spec['leaky']))
    return params


def discriminator_forward(params, input_img_nchw, target_img_nchw):
    """Matches SpectralNormDiscriminator.forward: concat on channel dim, then conv stack."""
    x = jnp.concatenate([input_img_nchw, target_img_nchw], axis=1)    # NCHW
    x = jnp.transpose(x, (0, 2, 3, 1)).astype(jnp.bfloat16)           # -> NHWC, bf16
    n_layers = len(params)
    for li, p in enumerate(params):
        cols, (n, oh, ow) = im2col(x, p['k'], p['k'], p['stride'], p['pad'])
        cout = p['w2d_scaled'].shape[1]
        last = (li == n_layers - 1)
        y = fused_conv_matmul(
            cols, p['w2d_scaled'], p['shift'],
            apply_leaky=p['leaky'],
            out_dtype=jnp.float32 if last else jnp.bfloat16)
        x = y.reshape(n, oh, ow, cout)
    return jnp.transpose(x.astype(jnp.float32), (0, 3, 1, 2))         # -> NCHW


# --------------------------------- main --------------------------------------

if __name__ == "__main__":
    key = jax.random.PRNGKey(0)
    kp, ki, kt = jax.random.split(key, 3)

    # Small but shape-consistent config: ndf=8, n_layers=3, 1+1 input channels, 32x32 spatial.
    params = init_params(kp, input_channels=1, output_channels=1, ndf=8, n_layers=3)
    input_img = jax.random.normal(ki, (2, 1, 32, 32), jnp.float32)
    target_img = jax.random.normal(kt, (2, 1, 32, 32), jnp.float32)

    fwd = jax.jit(lambda a, b: discriminator_forward(params, a, b))
    out = jax.block_until_ready(fwd(input_img, target_img))
    assert out.shape == (2, 1, 2, 2), out.shape   # 32 -> 16 -> 8 -> 4 -> 3 -> 2
    print("KERNEL_OK")
</pallas_src>

<mosaic_0001>
module attributes {stable_mosaic.version = 11 : i64} {
  func.func @_fused_conv_matmul_kernel(%arg0: i32, %arg1: memref<512x32xbf16, #tpu.memory_space<vmem>>, %arg2: memref<32x128xbf16, #tpu.memory_space<vmem>>, %arg3: memref<1x128xf32, #tpu.memory_space<vmem>>, %arg4: memref<512x128xbf16, #tpu.memory_space<vmem>>) attributes {dimension_semantics = [#tpu.dimension_semantics<parallel>], iteration_bounds = array<i64: 1>, scalar_prefetch = 0 : i64, scratch_operands = 0 : i64, tpu.core_type = #tpu.core_type<tc>, window_params = [{transform_indices = @transform_0, window_bounds = array<i64: 512, 32>}, {pipeline_mode = #tpu.pipeline_mode<synchronous>, transform_indices = @transform_1, window_bounds = array<i64: 32, 128>}, {pipeline_mode = #tpu.pipeline_mode<synchronous>, transform_indices = @transform_2, window_bounds = array<i64: 1, 128>}, {transform_indices = @transform_3, window_bounds = array<i64: 512, 128>}]} {
    %c0 = arith.constant 0 : index
    %c0_0 = arith.constant 0 : index
    %0 = vector.load %arg1[%c0, %c0_0] : memref<512x32xbf16, #tpu.memory_space<vmem>>, vector<512x32xbf16>
    %c0_1 = arith.constant 0 : index
    %c0_2 = arith.constant 0 : index
    %1 = vector.load %arg2[%c0_1, %c0_2] : memref<32x128xbf16, #tpu.memory_space<vmem>>, vector<32x128xbf16>
    %cst = arith.constant dense<0.000000e+00> : vector<512x128xf32>
    %2 = tpu.matmul %0, %1, %cst {dimension_numbers = #tpu.dot_dimension_numbers<[1], [0], [0], [1], [0, 0, 1, 1], [], []>} : vector<512x32xbf16>, vector<32x128xbf16>, vector<512x128xf32> -> vector<512x128xf32>
    %c0_3 = arith.constant 0 : index
    %c0_4 = arith.constant 0 : index
    %3 = vector.load %arg3[%c0_3, %c0_4] : memref<1x128xf32, #tpu.memory_space<vmem>>, vector<1x128xf32>
    %4 = vector.broadcast %3 : vector<1x128xf32> to vector<512x128xf32>
    %5 = arith.addf %2, %4 : vector<512x128xf32>
    %cst_5 = arith.constant 0.000000e+00 : f32
    %6 = vector.broadcast %cst_5 : f32 to vector<512x128xf32>
    %7 = arith.cmpf oge, %5, %6 : vector<512x128xf32>
    %cst_6 = arith.constant 2.000000e-01 : f32
    %8 = vector.broadcast %cst_6 : f32 to vector<512x128xf32>
    %9 = arith.mulf %5, %8 : vector<512x128xf32>
    %10 = arith.select %7, %5, %9 : vector<512x128xi1>, vector<512x128xf32>
    %11 = arith.truncf %10 : vector<512x128xf32> to vector<512x128xbf16>
    %c0_7 = arith.constant 0 : index
    %c0_8 = arith.constant 0 : index
    %12 = vector.load %arg4[%c0_7, %c0_8] : memref<512x128xbf16, #tpu.memory_space<vmem>>, vector<512x128xbf16>
    tpu.vector_store %arg4[%c0_7, %c0_8], %11 {strides = array<i32>} : memref<512x128xbf16, #tpu.memory_space<vmem>>, vector<512x128xbf16>,
    return
  }
  func.func @transform_0(%arg0: i32) -> (i32, i32) {
    %c0_i32 = arith.constant 0 : i32
    %c0_i32_0 = arith.constant 0 : i32
    return %arg0, %c0_i32 : i32, i32
  }
  func.func @transform_1(%arg0: i32) -> (i32, i32) {
    %c0_i32 = arith.constant 0 : i32
    %c0_i32_0 = arith.constant 0 : i32
    %c0_i32_1 = arith.constant 0 : i32
    return %c0_i32, %c0_i32_0 : i32, i32
  }
  func.func @transform_2(%arg0: i32) -> (i32, i32) {
    %c0_i32 = arith.constant 0 : i32
    %c0_i32_0 = arith.constant 0 : i32
    %c0_i32_1 = arith.constant 0 : i32
    return %c0_i32, %c0_i32_0 : i32, i32
  }
  func.func @transform_3(%arg0: i32) -> (i32, i32) {
    %c0_i32 = arith.constant 0 : i32
    %c0_i32_0 = arith.constant 0 : i32
    return %arg0, %c0_i32 : i32, i32
  }
}

module attributes {stable_mosaic.version = 11 : i64} {
  func.func @_fused_conv_matmul_kernel(%arg0: i32, %arg1: memref<128x128xbf16, #tpu.memory_space<vmem>>, %arg2: memref<128x128xbf16, #tpu.memory_space<vmem>>, %arg3: memref<1x128xf32, #tpu.memory_space<vmem>>, %arg4: memref<128x128xbf16, #tpu.memory_space<vmem>>) attributes {dimension_semantics = [#tpu.dimension_semantics<parallel>], iteration_bounds = array<i64: 1>, scalar_prefetch = 0 : i64, scratch_operands = 0 : i64, tpu.core_type = #tpu.core_type<tc>, window_params = [{transform_indices = @transform_0, window_bounds = array<i64: 128, 128>}, {pipeline_mode = #tpu.pipeline_mode<synchronous>, transform_indices = @transform_1, window_bounds = array<i64: 128, 128>}, {pipeline_mode = #tpu.pipeline_mode<synchronous>, transform_indices = @transform_2, window_bounds = array<i64: 1, 128>}, {transform_indices = @transform_3, window_bounds = array<i64: 128, 128>}]} {
    %c0 = arith.constant 0 : index
    %c0_0 = arith.constant 0 : index
    %0 = vector.load %arg1[%c0, %c0_0] : memref<128x128xbf16, #tpu.memory_space<vmem>>, vector<128x128xbf16>
    %c0_1 = arith.constant 0 : index
    %c0_2 = arith.constant 0 : index
    %1 = vector.load %arg2[%c0_1, %c0_2] : memref<128x128xbf16, #tpu.memory_space<vmem>>, vector<128x128xbf16>
    %cst = arith.constant dense<0.000000e+00> : vector<128x128xf32>
    %2 = tpu.matmul %0, %1, %cst {dimension_numbers = #tpu.dot_dimension_numbers<[1], [0], [0], [1], [0, 0, 1, 1], [], []>} : vector<128x128xbf16>, vector<128x128xbf16>, vector<128x128xf32> -> vector<128x128xf32>
    %c0_3 = arith.constant 0 : index
    %c0_4 = arith.constant 0 : index
    %3 = vector.load %arg3[%c0_3, %c0_4] : memref<1x128xf32, #tpu.memory_space<vmem>>, vector<1x128xf32>
    %4 = vector.broadcast %3 : vector<1x128xf32> to vector<128x128xf32>
    %5 = arith.addf %2, %4 : vector<128x128xf32>
    %cst_5 = arith.constant 0.000000e+00 : f32
    %6 = vector.broadcast %cst_5 : f32 to vector<128x128xf32>
    %7 = arith.cmpf oge, %5, %6 : vector<128x128xf32>
    %cst_6 = arith.constant 2.000000e-01 : f32
    %8 = vector.broadcast %cst_6 : f32 to vector<128x128xf32>
    %9 = arith.mulf %5, %8 : vector<128x128xf32>
    %10 = arith.select %7, %5, %9 : vector<128x128xi1>, vector<128x128xf32>
    %11 = arith.truncf %10 : vector<128x128xf32> to vector<128x128xbf16>
    %c0_7 = arith.constant 0 : index
    %c0_8 = arith.constant 0 : index
    %12 = vector.load %arg4[%c0_7, %c0_8] : memref<128x128xbf16, #tpu.memory_space<vmem>>, vector<128x128xbf16>
    tpu.vector_store %arg4[%c0_7, %c0_8], %11 {strides = array<i32>} : memref<128x128xbf16, #tpu.memory_space<vmem>>, vector<128x128xbf16>,
    return
  }
  func.func @transform_0(%arg0: i32) -> (i32, i32) {
    %c0_i32 = arith.constant 0 : i32
    %c0_i32_0 = arith.constant 0 : i32
    return %arg0, %c0_i32 : i32, i32
  }
  func.func @transform_1(%arg0: i32) -> (i32, i32) {
    %c0_i32 = arith.constant 0 : i32
    %c0_i32_0 = arith.constant 0 : i32
    %c0_i32_1 = arith.constant 0 : i32
    return %c0_i32, %c0_i32_0 : i32, i32
  }
  func.func @transform_2(%arg0: i32) -> (i32, i32) {
    %c0_i32 = arith.constant 0 : i32
    %c0_i32_0 = arith.constant 0 : i32
    %c0_i32_1 = arith.constant 0 : i32
    return %c0_i32, %c0_i32_0 : i32, i32
  }
  func.func @transform_3(%arg0: i32) -> (i32, i32) {
    %c0_i32 = arith.constant 0 : i32
    %c0_i32_0 = arith.constant 0 : i32
    return %arg0, %c0_i32 : i32, i32
  }
}

module attributes {stable_mosaic.version = 11 : i64} {
  func.func @_fused_conv_matmul_kernel(%arg0: i32, %arg1: memref<32x512xbf16, #tpu.memory_space<vmem>>, %arg2: memref<512x128xbf16, #tpu.memory_space<vmem>>, %arg3: memref<1x128xf32, #tpu.memory_space<vmem>>, %arg4: memref<32x128xbf16, #tpu.memory_space<vmem>>) attributes {dimension_semantics = [#tpu.dimension_semantics<parallel>], iteration_bounds = array<i64: 1>, scalar_prefetch = 0 : i64, scratch_operands = 0 : i64, tpu.core_type = #tpu.core_type<tc>, window_params = [{transform_indices = @transform_0, window_bounds = array<i64: 32, 512>}, {pipeline_mode = #tpu.pipeline_mode<synchronous>, transform_indices = @transform_1, window_bounds = array<i64: 512, 128>}, {pipeline_mode = #tpu.pipeline_mode<synchronous>, transform_indices = @transform_2, window_bounds = array<i64: 1, 128>}, {transform_indices = @transform_3, window_bounds = array<i64: 32, 128>}]} {
    %c0 = arith.constant 0 : index
    %c0_0 = arith.constant 0 : index
    %0 = vector.load %arg1[%c0, %c0_0] : memref<32x512xbf16, #tpu.memory_space<vmem>>, vector<32x512xbf16>
    %c0_1 = arith.constant 0 : index
    %c0_2 = arith.constant 0 : index
    %1 = vector.load %arg2[%c0_1, %c0_2] : memref<512x128xbf16, #tpu.memory_space<vmem>>, vector<512x128xbf16>
    %cst = arith.constant dense<0.000000e+00> : vector<32x128xf32>
    %2 = tpu.matmul %0, %1, %cst {dimension_numbers = #tpu.dot_dimension_numbers<[1], [0], [0], [1], [0, 0, 1, 1], [], []>} : vector<32x512xbf16>, vector<512x128xbf16>, vector<32x128xf32> -> vector<32x128xf32>
    %c0_3 = arith.constant 0 : index
    %c0_4 = arith.constant 0 : index
    %3 = vector.load %arg3[%c0_3, %c0_4] : memref<1x128xf32, #tpu.memory_space<vmem>>, vector<1x128xf32>
    %4 = vector.broadcast %3 : vector<1x128xf32> to vector<32x128xf32>
    %5 = arith.addf %2, %4 : vector<32x128xf32>
    %cst_5 = arith.constant 0.000000e+00 : f32
    %6 = vector.broadcast %cst_5 : f32 to vector<32x128xf32>
    %7 = arith.cmpf oge, %5, %6 : vector<32x128xf32>
    %cst_6 = arith.constant 2.000000e-01 : f32
    %8 = vector.broadcast %cst_6 : f32 to vector<32x128xf32>
    %9 = arith.mulf %5, %8 : vector<32x128xf32>
    %10 = arith.select %7, %5, %9 : vector<32x128xi1>, vector<32x128xf32>
    %11 = arith.truncf %10 : vector<32x128xf32> to vector<32x128xbf16>
    %c0_7 = arith.constant 0 : index
    %c0_8 = arith.constant 0 : index
    %12 = vector.load %arg4[%c0_7, %c0_8] : memref<32x128xbf16, #tpu.memory_space<vmem>>, vector<32x128xbf16>
    tpu.vector_store %arg4[%c0_7, %c0_8], %11 {strides = array<i32>} : memref<32x128xbf16, #tpu.memory_space<vmem>>, vector<32x128xbf16>,
    return
  }
  func.func @transform_0(%arg0: i32) -> (i32, i32) {
    %c0_i32 = arith.constant 0 : i32
    %c0_i32_0 = arith.constant 0 : i32
    return %arg0, %c0_i32 : i32, i32
  }
  func.func @transform_1(%arg0: i32) -> (i32, i32) {
    %c0_i32 = arith.constant 0 : i32
    %c0_i32_0 = arith.constant 0 : i32
    %c0_i32_1 = arith.constant 0 : i32
    return %c0_i32, %c0_i32_0 : i32, i32
  }
  func.func @transform_2(%arg0: i32) -> (i32, i32) {
    %c0_i32 = arith.constant 0 : i32
    %c0_i32_0 = arith.constant 0 : i32
    %c0_i32_1 = arith.constant 0 : i32
    return %c0_i32, %c0_i32_0 : i32, i32
  }
  func.func @transform_3(%arg0: i32) -> (i32, i32) {
    %c0_i32 = arith.constant 0 : i32
    %c0_i32_0 = arith.constant 0 : i32
    return %arg0, %c0_i32 : i32, i32
  }
}

module attributes {stable_mosaic.version = 11 : i64} {
  func.func @_fused_conv_matmul_kernel(%arg0: i32, %arg1: memref<32x256xbf16, #tpu.memory_space<vmem>>, %arg2: memref<256x128xbf16, #tpu.memory_space<vmem>>, %arg3: memref<1x128xf32, #tpu.memory_space<vmem>>, %arg4: memref<32x128xbf16, #tpu.memory_space<vmem>>) attributes {dimension_semantics = [#tpu.dimension_semantics<parallel>], iteration_bounds = array<i64: 1>, scalar_prefetch = 0 : i64, scratch_operands = 0 : i64, tpu.core_type = #tpu.core_type<tc>, window_params = [{transform_indices = @transform_0, window_bounds = array<i64: 32, 256>}, {pipeline_mode = #tpu.pipeline_mode<synchronous>, transform_indices = @transform_1, window_bounds = array<i64: 256, 128>}, {pipeline_mode = #tpu.pipeline_mode<synchronous>, transform_indices = @transform_2, window_bounds = array<i64: 1, 128>}, {transform_indices = @transform_3, window_bounds = array<i64: 32, 128>}]} {
    %c0 = arith.constant 0 : index
    %c0_0 = arith.constant 0 : index
    %0 = vector.load %arg1[%c0, %c0_0] : memref<32x256xbf16, #tpu.memory_space<vmem>>, vector<32x256xbf16>
    %c0_1 = arith.constant 0 : index
    %c0_2 = arith.constant 0 : index
    %1 = vector.load %arg2[%c0_1, %c0_2] : memref<256x128xbf16, #tpu.memory_space<vmem>>, vector<256x128xbf16>
    %cst = arith.constant dense<0.000000e+00> : vector<32x128xf32>
    %2 = tpu.matmul %0, %1, %cst {dimension_numbers = #tpu.dot_dimension_numbers<[1], [0], [0], [1], [0, 0, 1, 1], [], []>} : vector<32x256xbf16>, vector<256x128xbf16>, vector<32x128xf32> -> vector<32x128xf32>
    %c0_3 = arith.constant 0 : index
    %c0_4 = arith.constant 0 : index
    %3 = vector.load %arg3[%c0_3, %c0_4] : memref<1x128xf32, #tpu.memory_space<vmem>>, vector<1x128xf32>
    %4 = vector.broadcast %3 : vector<1x128xf32> to vector<32x128xf32>
    %5 = arith.addf %2, %4 : vector<32x128xf32>
    %cst_5 = arith.constant 0.000000e+00 : f32
    %6 = vector.broadcast %cst_5 : f32 to vector<32x128xf32>
    %7 = arith.cmpf oge, %5, %6 : vector<32x128xf32>
    %cst_6 = arith.constant 2.000000e-01 : f32
    %8 = vector.broadcast %cst_6 : f32 to vector<32x128xf32>
    %9 = arith.mulf %5, %8 : vector<32x128xf32>
    %10 = arith.select %7, %5, %9 : vector<32x128xi1>, vector<32x128xf32>
    %11 = arith.truncf %10 : vector<32x128xf32> to vector<32x128xbf16>
    %c0_7 = arith.constant 0 : index
    %c0_8 = arith.constant 0 : index
    %12 = vector.load %arg4[%c0_7, %c0_8] : memref<32x128xbf16, #tpu.memory_space<vmem>>, vector<32x128xbf16>
    tpu.vector_store %arg4[%c0_7, %c0_8], %11 {strides = array<i32>} : memref<32x128xbf16, #tpu.memory_space<vmem>>, vector<32x128xbf16>,
    return
  }
  func.func @transform_0(%arg0: i32) -> (i32, i32) {
    %c0_i32 = arith.constant 0 : i32
    %c0_i32_0 = arith.constant 0 : i32
    return %arg0, %c0_i32 : i32, i32
  }
  func.func @transform_1(%arg0: i32) -> (i32, i32) {
    %c0_i32 = arith.constant 0 : i32
    %c0_i32_0 = arith.constant 0 : i32
    %c0_i32_1 = arith.constant 0 : i32
    return %c0_i32, %c0_i32_0 : i32, i32
  }
  func.func @transform_2(%arg0: i32) -> (i32, i32) {
    %c0_i32 = arith.constant 0 : i32
    %c0_i32_0 = arith.constant 0 : i32
    %c0_i32_1 = arith.constant 0 : i32
    return %c0_i32, %c0_i32_0 : i32, i32
  }
  func.func @transform_3(%arg0: i32) -> (i32, i32) {
    %c0_i32 = arith.constant 0 : i32
    %c0_i32_0 = arith.constant 0 : i32
    return %arg0, %c0_i32 : i32, i32
  }
}

module attributes {stable_mosaic.version = 11 : i64} {
  func.func @_fused_conv_matmul_kernel(%arg0: i32, %arg1: memref<16x1024xbf16, #tpu.memory_space<vmem>>, %arg2: memref<1024x128xbf16, #tpu.memory_space<vmem>>, %arg3: memref<1x128xf32, #tpu.memory_space<vmem>>, %arg4: memref<16x128xf32, #tpu.memory_space<vmem>>) attributes {dimension_semantics = [#tpu.dimension_semantics<parallel>], iteration_bounds = array<i64: 1>, scalar_prefetch = 0 : i64, scratch_operands = 0 : i64, tpu.core_type = #tpu.core_type<tc>, window_params = [{transform_indices = @transform_0, window_bounds = array<i64: 16, 1024>}, {pipeline_mode = #tpu.pipeline_mode<synchronous>, transform_indices = @transform_1, window_bounds = array<i64: 1024, 128>}, {pipeline_mode = #tpu.pipeline_mode<synchronous>, transform_indices = @transform_2, window_bounds = array<i64: 1, 128>}, {transform_indices = @transform_3, window_bounds = array<i64: 16, 128>}]} {
    %c0 = arith.constant 0 : index
    %c0_0 = arith.constant 0 : index
    %0 = vector.load %arg1[%c0, %c0_0] : memref<16x1024xbf16, #tpu.memory_space<vmem>>, vector<16x1024xbf16>
    %c0_1 = arith.constant 0 : index
    %c0_2 = arith.constant 0 : index
    %1 = vector.load %arg2[%c0_1, %c0_2] : memref<1024x128xbf16, #tpu.memory_space<vmem>>, vector<1024x128xbf16>
    %cst = arith.constant dense<0.000000e+00> : vector<16x128xf32>
    %2 = tpu.matmul %0, %1, %cst {dimension_numbers = #tpu.dot_dimension_numbers<[1], [0], [0], [1], [0, 0, 1, 1], [], []>} : vector<16x1024xbf16>, vector<1024x128xbf16>, vector<16x128xf32> -> vector<16x128xf32>
    %c0_3 = arith.constant 0 : index
    %c0_4 = arith.constant 0 : index
    %3 = vector.load %arg3[%c0_3, %c0_4] : memref<1x128xf32, #tpu.memory_space<vmem>>, vector<1x128xf32>
    %4 = vector.broadcast %3 : vector<1x128xf32> to vector<16x128xf32>
    %5 = arith.addf %2, %4 : vector<16x128xf32>
    %c0_5 = arith.constant 0 : index
    %c0_6 = arith.constant 0 : index
    %6 = vector.load %arg4[%c0_5, %c0_6] : memref<16x128xf32, #tpu.memory_space<vmem>>, vector<16x128xf32>
    tpu.vector_store %arg4[%c0_5, %c0_6], %5 {strides = array<i32>} : memref<16x128xf32, #tpu.memory_space<vmem>>, vector<16x128xf32>,
    return
  }
  func.func @transform_0(%arg0: i32) -> (i32, i32) {
    %c0_i32 = arith.constant 0 : i32
    %c0_i32_0 = arith.constant 0 : i32
    return %arg0, %c0_i32 : i32, i32
  }
  func.func @transform_1(%arg0: i32) -> (i32, i32) {
    %c0_i32 = arith.constant 0 : i32
    %c0_i32_0 = arith.constant 0 : i32
    %c0_i32_1 = arith.constant 0 : i32
    return %c0_i32, %c0_i32_0 : i32, i32
  }
  func.func @transform_2(%arg0: i32) -> (i32, i32) {
    %c0_i32 = arith.constant 0 : i32
    %c0_i32_0 = arith.constant 0 : i32
    %c0_i32_1 = arith.constant 0 : i32
    return %c0_i32, %c0_i32_0 : i32, i32
  }
  func.func @transform_3(%arg0: i32) -> (i32, i32) {
    %c0_i32 = arith.constant 0 : i32
    %c0_i32_0 = arith.constant 0 : i32
    return %arg0, %c0_i32 : i32, i32
  }
}

</mosaic_0001>

<bundles_post_ra>
// kernel: _lambda_.5
= control target key start
LH: loop header
LB: loop body
LE: loop exit
PB: predicated region body
PF: predicated region fallthrough
CT: control target
= control target key end

     0   :  { %vm262_vm0 = vcmask 261120   ;;  %s2018_s1 = inlined_call_operand.vmem [shape: bf16[32,128], index: 1, kind: input, shape index: {}]   ;;  %s2019_s0 = inlined_call_operand.vmem [shape: bf16[512,32], index: 0, kind: input, shape index: {}]   ;;  %s2020_s2 = inlined_call_operand.vmem [shape: f32[1,128], index: 2, kind: input, shape index: {}]   ;;  %s2021_s3 = inlined_call_operand.vmem [shape: bf16[512,128], index: 3, kind: output, shape index: {}]  }
   0x1   :  { %v1656_v0 = vld [vmem:[%s2018_s1] sm:$0xff]   ;;  %v1657_v1 = vld [vmem:[%s2018_s1 + $0x8] sm:$0xff]   ;;  %v1662_v6 = vld [vmem:[%s2019_s0 + $0x10] sm:$0xff]  }
   0x2   :  { %1584 = vmatprep.subr.bf16.mxu0 %v1656_v0  ;;  %1652 = vmatprep.subr.bf16.mxu1 %v1656_v0  ;;  %v1658_v2 = vld [vmem:[%s2019_s0] sm:$0xff]   ;;  %v1660_v4 = vld [vmem:[%s2019_s0 + $0x8] sm:$0xff]   ;;  %v1663_v7 = vld [vmem:[%s2019_s0 + $0x90] sm:$0xff]  }
   0x3   :  { %1585 = vmatpush3.bf16.msra.mxu0 %v1656_v0  ;;  %1654 = vmatpush3.bf16.msra.mxu1 %v1656_v0  ;;  %v1659_v3 = vld [vmem:[%s2019_s0 + $0x80] sm:$0xff]   ;;  %v1661_v5 = vld [vmem:[%s2019_s0 + $0x88] sm:$0xff]   ;;  %v1664_v8 = vld [vmem:[%s2019_s0 + $0x18] sm:$0xff]  }
   0x4   :  { %1586 = vmatprep.subr.bf16.mxu0 %v1657_v1  ;;  %1653 = vmatprep.subr.bf16.mxu1 %v1657_v1  ;;  %v1665_v9 = vld [vmem:[%s2019_s0 + $0x98] sm:$0xff]   ;;  %v1666_v10 = vld [vmem:[%s2019_s0 + $0x20] sm:$0xff]   ;;  %v1668_v12 = vld [vmem:[%s2019_s0 + $0x28] sm:$0xff]  }
   0x5   :  { %1588 = vmatprep.mubr.msk.bf16.mxu0 %vm262_vm0, %v1658_v2  ;;  %1620 = vmatprep.mubr.msk.bf16.mxu1 %vm262_vm0, %v1659_v3  ;;  %v1667_v11 = vld [vmem:[%s2019_s0 + $0xa0] sm:$0xff]   ;;  %v1669_v13 = vld [vmem:[%s2019_s0 + $0xa8] sm:$0xff]   ;;  %v1670_v14 = vld [vmem:[%s2019_s0 + $0x30] sm:$0xff]  }
   0x6   :  { %v1671_v15 = vld [vmem:[%s2019_s0 + $0xb0] sm:$0xff]   ;;  %v1672_v16 = vld [vmem:[%s2019_s0 + $0x38] sm:$0xff]   ;;  %v1674_v18 = vld [vmem:[%s2019_s0 + $0x40] sm:$0xff]  }
   0x7   :  { %1587 = vmatpush3.bf16.msra.mxu0 %v1657_v1  ;;  %1655 = vmatpush3.bf16.msra.mxu1 %v1657_v1  ;;  %v1673_v17 = vld [vmem:[%s2019_s0 + $0xb8] sm:$0xff]   ;;  %v1675_v19 = vld [vmem:[%s2019_s0 + $0xc0] sm:$0xff]   ;;  %v1676_v20 = vld [vmem:[%s2019_s0 + $0x48] sm:$0xff]  }
   0x8   :  { %v1677_v21 = vld [vmem:[%s2019_s0 + $0xc8] sm:$0xff]   ;;  %v1678_v22 = vld [vmem:[%s2019_s0 + $0x50] sm:$0xff]   ;;  %v1680_v24 = vld [vmem:[%s2019_s0 + $0x58] sm:$0xff]  }
   0x9   :  { %v1679_v23 = vld [vmem:[%s2019_s0 + $0xd0] sm:$0xff]   ;;  %v1681_v25 = vld [vmem:[%s2019_s0 + $0xd8] sm:$0xff]   ;;  %v1682_v26 = vld [vmem:[%s2019_s0 + $0x60] sm:$0xff]  }
   0xa   :  { %1589 = vmatmul.mubr.msk.bf16.vlgmr.msra.gmra.mrb[0].mxu0 %vm262_vm0, %v1660_v4  ;;  %1621 = vmatmul.mubr.msk.bf16.vlgmr.msra.gmra.mrb[0].mxu1 %vm262_vm0, %v1661_v5  ;;  %v1683_v27 = vld [vmem:[%s2019_s0 + $0xe0] sm:$0xff]   ;;  %v1684_v28 = vld [vmem:[%s2019_s0 + $0x68] sm:$0xff]   ;;  %v1686_v30 = vld [vmem:[%s2019_s0 + $0x70] sm:$0xff]  }
   0xb   :  { %1592 = vmatprep.mubr.msk.bf16.mxu0 %vm262_vm0, %v1662_v6  ;;  %1624 = vmatprep.mubr.msk.bf16.mxu1 %vm262_vm0, %v1663_v7  ;;  %v1685_v29 = vld [vmem:[%s2019_s0 + $0xe8] sm:$0xff]   ;;  %v1687_v31 = vld [vmem:[%s2019_s0 + $0xf0] sm:$0xff]   ;;  %v1688_v32 = vld [vmem:[%s2019_s0 + $0x78] sm:$0xff]  }
   0xc   :  { %v1689_v33 = vld [vmem:[%s2019_s0 + $0xf8] sm:$0xff]   ;;  %v1847_v34 = vld [vmem:[%s2020_s2] ss:$0 sm:$0xff] }
  0x12   :  { %1593 = vmatmul.mubr.msk.bf16.gmra.mrb[4].mxu0 %vm262_vm0, %v1664_v8  ;;  %1625 = vmatmul.mubr.msk.bf16.gmra.mrb[4].mxu1 %vm262_vm0, %v1665_v9 }
  0x13   :  { %1596 = vmatprep.mubr.msk.bf16.mxu0 %vm262_vm0, %v1666_v10  ;;  %1628 = vmatprep.mubr.msk.bf16.mxu1 %vm262_vm0, %v1667_v11 }
  0x1a   :  { %1597 = vmatmul.mubr.msk.bf16.gmra.mrb[8].mxu0 %vm262_vm0, %v1668_v12  ;;  %1629 = vmatmul.mubr.msk.bf16.gmra.mrb[8].mxu1 %vm262_vm0, %v1669_v13 }
  0x1b   :  { %1600 = vmatprep.mubr.msk.bf16.mxu0 %vm262_vm0, %v1670_v14  ;;  %1632 = vmatprep.mubr.msk.bf16.mxu1 %vm262_vm0, %v1671_v15 }
  0x22   :  { %1601 = vmatmul.mubr.msk.bf16.gmra.mrb[12].mxu0 %vm262_vm0, %v1672_v16  ;;  %1633 = vmatmul.mubr.msk.bf16.gmra.mrb[12].mxu1 %vm262_vm0, %v1673_v17 }
  0x23   :  { %1604 = vmatprep.mubr.msk.bf16.mxu0 %vm262_vm0, %v1674_v18  ;;  %1636 = vmatprep.mubr.msk.bf16.mxu1 %vm262_vm0, %v1675_v19 }
  0x2a   :  { %1605 = vmatmul.mubr.msk.bf16.gmra.mrb[16].mxu0 %vm262_vm0, %v1676_v20  ;;  %1637 = vmatmul.mubr.msk.bf16.gmra.mrb[16].mxu1 %vm262_vm0, %v1677_v21 }
  0x2b   :  { %1608 = vmatprep.mubr.msk.bf16.mxu0 %vm262_vm0, %v1678_v22  ;;  %1640 = vmatprep.mubr.msk.bf16.mxu1 %vm262_vm0, %v1679_v23 }
  0x32   :  { %1609 = vmatmul.mubr.msk.bf16.gmra.mrb[20].mxu0 %vm262_vm0, %v1680_v24  ;;  %1641 = vmatmul.mubr.msk.bf16.gmra.mrb[20].mxu1 %vm262_vm0, %v1681_v25 }
  0x33   :  { %1612 = vmatprep.mubr.msk.bf16.mxu0 %vm262_vm0, %v1682_v26  ;;  %1644 = vmatprep.mubr.msk.bf16.mxu1 %vm262_vm0, %v1683_v27 }
  0x3a   :  { %1613 = vmatmul.mubr.msk.bf16.gmra.mrb[24].mxu0 %vm262_vm0, %v1684_v28  ;;  %1645 = vmatmul.mubr.msk.bf16.gmra.mrb[24].mxu1 %vm262_vm0, %v1685_v29 }
  0x3b   :  { %1616 = vmatprep.mubr.msk.bf16.mxu0 %vm262_vm0, %v1686_v30  ;;  %1648 = vmatprep.mubr.msk.bf16.mxu1 %vm262_vm0, %v1687_v31 }
  0x42   :  { %1617 = vmatmul.mubr.msk.bf16.gmra.mrb[28].mxu0 %vm262_vm0, %v1688_v32  ;;  %1649 = vmatmul.mubr.msk.bf16.gmra.mrb[28].mxu1 %vm262_vm0, %v1689_v33 }
  0xdd   :  { %v1590_v35 = vpop.f32.mrb[0].mxu0  ;;  %v1622_v36 = vpop.f32.mrb[0].mxu1 }
  0xde   :  { %v402_v37 = vadd.f32 %v1590_v35, %v1847_v34  ;;  %v530_v38 = vadd.f32 %v1622_v36, %v1847_v34  ;;  %v393_v39 = vpop.f32.mrb[1].mxu0  ;;  %v521_v40 = vpop.f32.mrb[1].mxu1 }
  0xdf   :  { %v394_v41 = vadd.f32 %v1847_v34, %v393_v39  ;;  %v522_v42 = vadd.f32 %v1847_v34, %v521_v40  ;;  %v1591_v43 = vpop.f32.mrb[2].mxu0  ;;  %v1623_v44 = vpop.f32.mrb[2].mxu1 }
  0xe0   :  { %vm650_vm1 = vcmp.ge.f32.partialorder %v402_v37, 0.0  ;;  %v714_v45 = vmul.f32 0.2, %v402_v37  ;;  %vm682_vm2 = vcmp.ge.f32.partialorder %v530_v38, 0.0  ;;  %v746_v46 = vmul.f32 0.2, %v530_v38 }
  0xe1   :  { %vm648_vm3 = vcmp.ge.f32.partialorder %v394_v41, 0.0  ;;  %v712_v47 = vmul.f32 0.2, %v394_v41  ;;  %vm680_vm4 = vcmp.ge.f32.partialorder %v522_v42, 0.0  ;;  %v744_v48 = vmul.f32 0.2, %v522_v42 }
  0xe2   :  { %v405_v49 = vadd.f32 %v1591_v43, %v1847_v34  ;;  %v533_v50 = vadd.f32 %v1623_v44, %v1847_v34  ;;  %v396_v51 = vpop.f32.mrb[3].mxu0  ;;  %v524_v52 = vpop.f32.mrb[3].mxu1  ;;  %v778_v53 = vsel %vm650_vm1, %v402_v37, %v714_v45  ;;  %v810_v54 = vsel %vm682_vm2, %v530_v38, %v746_v46 }
  0xe3   :  { %v397_v55 = vadd.f32 %v1847_v34, %v396_v51  ;;  %v525_v56 = vadd.f32 %v1847_v34, %v524_v52  ;;  %v776_v61 = vsel %vm648_vm3, %v394_v41, %v712_v47  ;;  %v808_v62 = vsel %vm680_vm4, %v522_v42, %v744_v48 }
  0xe4   :  { %vm651_vm5 = vcmp.ge.f32.partialorder %v405_v49, 0.0  ;;  %v715_v57 = vmul.f32 0.2, %v405_v49  ;;  %vm683_vm6 = vcmp.ge.f32.partialorder %v533_v50, 0.0  ;;  %v747_v58 = vmul.f32 0.2, %v533_v50 }
  0xe5   :  { %vm649_vm7 = vcmp.ge.f32.partialorder %v397_v55, 0.0  ;;  %v713_v59 = vmul.f32 0.2, %v397_v55  ;;  %vm681_vm8 = vcmp.ge.f32.partialorder %v525_v56, 0.0  ;;  %v745_v60 = vmul.f32 0.2, %v525_v56 }
  0xe6   :  { %v779_v63 = vsel %vm651_vm5, %v405_v49, %v715_v57  ;;  %v811_v0 = vsel %vm683_vm6, %v533_v50, %v747_v58  ;;  %v1594_v1 = vpop.f32.mrb[4].mxu0  ;;  %v1626_v2 = vpop.f32.mrb[4].mxu1 }
  0xe7   :  { %v1367_v3 = vpack.c.bf16 %v779_v63, %v778_v53  ;;  %v1447_v4 = vpack.c.bf16 %v811_v0, %v810_v54  ;;  %v777_v5 = vsel %vm649_vm7, %v397_v55, %v713_v59  ;;  %v809_v6 = vsel %vm681_vm8, %v525_v56, %v745_v60  ;;  %v409_v7 = vpop.f32.mrb[5].mxu0  ;;  %v537_v8 = vpop.f32.mrb[5].mxu1 }
  0xe8   :  { %v1362_v9 = vpack.c.bf16 %v777_v5, %v776_v61  ;;  %v1442_v10 = vpack.c.bf16 %v809_v6, %v808_v62  ;;  %v418_v11 = vadd.f32 %v1594_v1, %v1847_v34  ;;  %v546_v12 = vadd.f32 %v1626_v2, %v1847_v34  ;;  %v1595_v13 = vpop.f32.mrb[6].mxu0  ;;  %v1627_v14 = vpop.f32.mrb[6].mxu1 }
  0xe9   :  { %1519 = vst [vmem:[%s2021_s3 + $0x8] sm:$0xff] %v1367_v3   ;;  %1535 = vst [vmem:[%s2021_s3 + $0x88] sm:$0xff] %v1447_v4   ;;  %v410_v15 = vadd.f32 %v1847_v34, %v409_v7  ;;  %v538_v16 = vadd.f32 %v1847_v34, %v537_v8  ;;  %v421_v17 = vadd.f32 %v1595_v13, %v1847_v34  ;;  %v412_v19 = vpop.f32.mrb[7].mxu0  ;;  %v540_v20 = vpop.f32.mrb[7].mxu1 }
  0xea   :  { %v549_v18 = vadd.f32 %v1627_v14, %v1847_v34  ;;  %1363 = vst [vmem:[%s2021_s3] sm:$0xff] %v1362_v9   ;;  %1534 = vst [vmem:[%s2021_s3 + $0x80] sm:$0xff] %v1442_v10   ;;  %vm654_vm9 = vcmp.ge.f32.partialorder %v418_v11, 0.0  ;;  %v718_v21 = vmul.f32 0.2, %v418_v11  ;;  %vm686_vm10 = vcmp.ge.f32.partialorder %v546_v12, 0.0 }
  0xeb   :  { %v750_v22 = vmul.f32 0.2, %v546_v12  ;;  %vm652_vm11 = vcmp.ge.f32.partialorder %v410_v15, 0.0  ;;  %v716_v23 = vmul.f32 0.2, %v410_v15  ;;  %vm684_vm12 = vcmp.ge.f32.partialorder %v538_v16, 0.0 }
  0xec   :  { %v748_v24 = vmul.f32 0.2, %v538_v16  ;;  %v782_v25 = vsel %vm654_vm9, %v418_v11, %v718_v21  ;;  %vm655_vm13 = vcmp.ge.f32.partialorder %v421_v17, 0.0  ;;  %v719_v27 = vmul.f32 0.2, %v421_v17 }
  0xed   :  { %v814_v26 = vsel %vm686_vm10, %v546_v12, %v750_v22  ;;  %v780_v28 = vsel %vm652_vm11, %v410_v15, %v716_v23  ;;  %vm687_vm14 = vcmp.ge.f32.partialorder %v549_v18, 0.0  ;;  %v751_v30 = vmul.f32 0.2, %v549_v18  ;;  %v1598_v31 = vpop.f32.mrb[8].mxu0  ;;  %v1630_v32 = vpop.f32.mrb[8].mxu1 }
  0xee   :  { %v812_v29 = vsel %vm684_vm12, %v538_v16, %v748_v24  ;;  %v783_v33 = vsel %vm655_vm13, %v421_v17, %v719_v27  ;;  %v413_v35 = vadd.f32 %v1847_v34, %v412_v19  ;;  %v541_v36 = vadd.f32 %v1847_v34, %v540_v20  ;;  %v425_v38 = vpop.f32.mrb[9].mxu0  ;;  %v553_v39 = vpop.f32.mrb[9].mxu1 }
  0xef   :  { %v434_v37 = vadd.f32 %v1598_v31, %v1847_v34  ;;  %v1377_v40 = vpack.c.bf16 %v783_v33, %v782_v25  ;;  %v815_v41 = vsel %vm687_vm14, %v549_v18, %v751_v30  ;;  %v562_v42 = vadd.f32 %v1630_v32, %v1847_v34  ;;  %v1599_v44 = vpop.f32.mrb[10].mxu0  ;;  %v1631_v45 = vpop.f32.mrb[10].mxu1 }
  0xf0   :  { %v426_v43 = vadd.f32 %v1847_v34, %v425_v38  ;;  %v1457_v46 = vpack.c.bf16 %v815_v41, %v814_v26  ;;  %vm653_vm15 = vcmp.ge.f32.partialorder %v413_v35, 0.0  ;;  %v717_v47 = vmul.f32 0.2, %v413_v35  ;;  %v428_v48 = vpop.f32.mrb[11].mxu0  ;;  %v556_v49 = vpop.f32.mrb[11].mxu1 }
  0xf1   :  { %vm685_vm0 = vcmp.ge.f32.partialorder %v541_v36, 0.0  ;;  %1521 = vst [vmem:[%s2021_s3 + $0x18] sm:$0xff] %v1377_v40   ;;  %v749_v50 = vmul.f32 0.2, %v541_v36  ;;  %vm658_vm1 = vcmp.ge.f32.partialorder %v434_v37, 0.0  ;;  %vm690_vm2 = vcmp.ge.f32.partialorder %v562_v42, 0.0 }
  0xf2   :  { %v722_v51 = vmul.f32 0.2, %v434_v37  ;;  %1537 = vst [vmem:[%s2021_s3 + $0x98] sm:$0xff] %v1457_v46   ;;  %v781_v52 = vsel %vm653_vm15, %v413_v35, %v717_v47  ;;  %v754_v53 = vmul.f32 0.2, %v562_v42  ;;  %vm656_vm3 = vcmp.ge.f32.partialorder %v426_v43, 0.0 }
  0xf3   :  { %v720_v54 = vmul.f32 0.2, %v426_v43  ;;  %v1372_v55 = vpack.c.bf16 %v781_v52, %v780_v28  ;;  %v813_v56 = vsel %vm685_vm0, %v541_v36, %v749_v50  ;;  %v554_v58 = vadd.f32 %v1847_v34, %v553_v39 }
  0xf4   :  { %v786_v57 = vsel %vm658_vm1, %v434_v37, %v722_v51  ;;  %v1452_v59 = vpack.c.bf16 %v813_v56, %v812_v29  ;;  %v818_v60 = vsel %vm690_vm2, %v562_v42, %v754_v53  ;;  %v437_v62 = vadd.f32 %v1599_v44, %v1847_v34 }
  0xf5   :  { %v784_v61 = vsel %vm656_vm3, %v426_v43, %v720_v54  ;;  %1520 = vst [vmem:[%s2021_s3 + $0x10] sm:$0xff] %v1372_v55   ;;  %vm688_vm4 = vcmp.ge.f32.partialorder %v554_v58, 0.0  ;;  %v752_v63 = vmul.f32 0.2, %v554_v58  ;;  %v565_v0 = vadd.f32 %v1631_v45, %v1847_v34  ;;  %v1602_v2 = vpop.f32.mrb[12].mxu0  ;;  %v1634_v3 = vpop.f32.mrb[12].mxu1 }
  0xf6   :  { %v429_v1 = vadd.f32 %v1847_v34, %v428_v48  ;;  %1536 = vst [vmem:[%s2021_s3 + $0x90] sm:$0xff] %v1452_v59   ;;  %vm659_vm5 = vcmp.ge.f32.partialorder %v437_v62, 0.0  ;;  %v723_v4 = vmul.f32 0.2, %v437_v62  ;;  %v557_v5 = vadd.f32 %v1847_v34, %v556_v49  ;;  %v441_v7 = vpop.f32.mrb[13].mxu0  ;;  %v569_v8 = vpop.f32.mrb[13].mxu1 }
  0xf7   :  { %v450_v6 = vadd.f32 %v1602_v2, %v1847_v34  ;;  %v816_v9 = vsel %vm688_vm4, %v554_v58, %v752_v63  ;;  %vm691_vm6 = vcmp.ge.f32.partialorder %v565_v0, 0.0  ;;  %v755_v10 = vmul.f32 0.2, %v565_v0  ;;  %v1603_v11 = vpop.f32.mrb[14].mxu0  ;;  %v1635_v12 = vpop.f32.mrb[14].mxu1 }
  0xf8   :  { %vm657_vm7 = vcmp.ge.f32.partialorder %v429_v1, 0.0  ;;  %v787_v13 = vsel %vm659_vm5, %v437_v62, %v723_v4  ;;  %v721_v14 = vmul.f32 0.2, %v429_v1  ;;  %vm689_vm8 = vcmp.ge.f32.partialorder %v557_v5, 0.0  ;;  %v444_v16 = vpop.f32.mrb[15].mxu0  ;;  %v572_v20 = vpop.f32.mrb[15].mxu1 }
  0xf9   :  { %v753_v15 = vmul.f32 0.2, %v557_v5  ;;  %v1387_v17 = vpack.c.bf16 %v787_v13, %v786_v57  ;;  %v819_v18 = vsel %vm691_vm6, %v565_v0, %v755_v10  ;;  %vm662_vm9 = vcmp.ge.f32.partialorder %v450_v6, 0.0 }
  0xfa   :  { %v726_v19 = vmul.f32 0.2, %v450_v6  ;;  %v1467_v21 = vpack.c.bf16 %v819_v18, %v818_v60  ;;  %v785_v22 = vsel %vm657_vm7, %v429_v1, %v721_v14  ;;  %v578_v24 = vadd.f32 %v1634_v3, %v1847_v34 }
  0xfb   :  { %v817_v23 = vsel %vm689_vm8, %v557_v5, %v753_v15  ;;  %1523 = vst [vmem:[%s2021_s3 + $0x28] sm:$0xff] %v1387_v17   ;;  %v1382_v25 = vpack.c.bf16 %v785_v22, %v784_v61  ;;  %v442_v28 = vadd.f32 %v1847_v34, %v441_v7  ;;  %v570_v30 = vadd.f32 %v1847_v34, %v569_v8 }
  0xfc   :  { %v1462_v26 = vpack.c.bf16 %v817_v23, %v816_v9  ;;  %v790_v27 = vsel %vm662_vm9, %v450_v6, %v726_v19  ;;  %1539 = vst [vmem:[%s2021_s3 + $0xa8] sm:$0xff] %v1467_v21   ;;  %vm694_vm10 = vcmp.ge.f32.partialorder %v578_v24, 0.0  ;;  %v758_v29 = vmul.f32 0.2, %v578_v24 }
  0xfd   :  { %v453_v31 = vadd.f32 %v1603_v11, %v1847_v34  ;;  %1522 = vst [vmem:[%s2021_s3 + $0x20] sm:$0xff] %v1382_v25   ;;  %vm660_vm11 = vcmp.ge.f32.partialorder %v442_v28, 0.0  ;;  %v724_v32 = vmul.f32 0.2, %v442_v28  ;;  %v581_v33 = vadd.f32 %v1635_v12, %v1847_v34  ;;  %v1606_v36 = vpop.f32.mrb[16].mxu0  ;;  %v1638_v37 = vpop.f32.mrb[16].mxu1 }
  0xfe   :  { %1538 = vst [vmem:[%s2021_s3 + $0xa0] sm:$0xff] %v1462_v26   ;;  %v445_v35 = vadd.f32 %v1847_v34, %v444_v16  ;;  %v822_v38 = vsel %vm694_vm10, %v578_v24, %v758_v29  ;;  %vm692_vm12 = vcmp.ge.f32.partialorder %v570_v30, 0.0  ;;  %v756_v39 = vmul.f32 0.2, %v570_v30  ;;  %v457_v40 = vpop.f32.mrb[17].mxu0  ;;  %v585_v41 = vpop.f32.mrb[17].mxu1 }
  0xff   :  { %vm663_vm13 = vcmp.ge.f32.partialorder %v453_v31, 0.0  ;;  %v788_v42 = vsel %vm660_vm11, %v442_v28, %v724_v32  ;;  %v727_v43 = vmul.f32 0.2, %v453_v31  ;;  %vm695_vm14 = vcmp.ge.f32.partialorder %v581_v33, 0.0  ;;  %v1607_v45 = vpop.f32.mrb[18].mxu0  ;;  %v1639_v49 = vpop.f32.mrb[18].mxu1 }
 0x100   :  { %v759_v44 = vmul.f32 0.2, %v581_v33  ;;  %v820_v46 = vsel %vm692_vm12, %v570_v30, %v756_v39  ;;  %vm661_vm15 = vcmp.ge.f32.partialorder %v445_v35, 0.0  ;;  %v725_v47 = vmul.f32 0.2, %v445_v35  ;;  %v460_v50 = vpop.f32.mrb[19].mxu0 }
 0x101   :  { %v573_v48 = vadd.f32 %v1847_v34, %v572_v20  ;;  %v791_v51 = vsel %vm663_vm13, %v453_v31, %v727_v43  ;;  %v466_v53 = vadd.f32 %v1606_v36, %v1847_v34  ;;  %v594_v54 = vadd.f32 %v1638_v37, %v1847_v34  ;;  %v588_v55 = vpop.f32.mrb[19].mxu1 }
 0x102   :  { %v823_v52 = vsel %vm695_vm14, %v581_v33, %v759_v44  ;;  %v1397_v56 = vpack.c.bf16 %v791_v51, %v790_v27  ;;  %v789_v58 = vsel %vm661_vm15, %v445_v35, %v725_v47  ;;  %v458_v63 = vadd.f32 %v1847_v34, %v457_v40 }
 0x103   :  { %v1477_v57 = vpack.c.bf16 %v823_v52, %v822_v38  ;;  %vm693_vm0 = vcmp.ge.f32.partialorder %v573_v48, 0.0  ;;  %v1392_v59 = vpack.c.bf16 %v789_v58, %v788_v42  ;;  %v757_v60 = vmul.f32 0.2, %v573_v48 }
 0x104   :  { %vm666_vm1 = vcmp.ge.f32.partialorder %v466_v53, 0.0  ;;  %v730_v61 = vmul.f32 0.2, %v466_v53  ;;  %1525 = vst [vmem:[%s2021_s3 + $0x38] sm:$0xff] %v1397_v56   ;;  %vm698_vm2 = vcmp.ge.f32.partialorder %v594_v54, 0.0  ;;  %v586_v0 = vadd.f32 %v1847_v34, %v585_v41 }
 0x105   :  { %1541 = vst [vmem:[%s2021_s3 + $0xb8] sm:$0xff] %v1477_v57   ;;  %v762_v62 = vmul.f32 0.2, %v594_v54  ;;  %1524 = vst [vmem:[%s2021_s3 + $0x30] sm:$0xff] %v1392_v59   ;;  %v821_v1 = vsel %vm693_vm0, %v573_v48, %v757_v60  ;;  %v469_v3 = vadd.f32 %v1607_v45, %v1847_v34  ;;  %v597_v4 = vadd.f32 %v1639_v49, %v1847_v34  ;;  %v1610_v5 = vpop.f32.mrb[20].mxu0  ;;  %v1642_v6 = vpop.f32.mrb[20].mxu1 }
 0x106   :  { %v794_v2 = vsel %vm666_vm1, %v466_v53, %v730_v61  ;;  %v1472_v7 = vpack.c.bf16 %v821_v1, %v820_v46  ;;  %vm664_vm3 = vcmp.ge.f32.partialorder %v458_v63, 0.0  ;;  %v728_v9 = vmul.f32 0.2, %v458_v63  ;;  %v473_v10 = vpop.f32.mrb[21].mxu0  ;;  %v601_v11 = vpop.f32.mrb[21].mxu1 }
 0x107   :  { %v826_v8 = vsel %vm698_vm2, %v594_v54, %v762_v62  ;;  %vm696_vm4 = vcmp.ge.f32.partialorder %v586_v0, 0.0  ;;  %v760_v12 = vmul.f32 0.2, %v586_v0  ;;  %vm667_vm5 = vcmp.ge.f32.partialorder %v469_v3, 0.0  ;;  %v1611_v17 = vpop.f32.mrb[22].mxu0  ;;  %v1643_v18 = vpop.f32.mrb[22].mxu1 }
 0x108   :  { %v731_v13 = vmul.f32 0.2, %v469_v3  ;;  %1540 = vst [vmem:[%s2021_s3 + $0xb0] sm:$0xff] %v1472_v7   ;;  %v792_v14 = vsel %vm664_vm3, %v458_v63, %v728_v9  ;;  %vm699_vm6 = vcmp.ge.f32.partialorder %v597_v4, 0.0  ;;  %v763_v15 = vmul.f32 0.2, %v597_v4 }
 0x109   :  { %v461_v16 = vadd.f32 %v1847_v34, %v460_v50  ;;  %v824_v19 = vsel %vm696_vm4, %v586_v0, %v760_v12  ;;  %v589_v21 = vadd.f32 %v1847_v34, %v588_v55  ;;  %v482_v22 = vadd.f32 %v1610_v5, %v1847_v34  ;;  %v476_v23 = vpop.f32.mrb[23].mxu0  ;;  %v604_v24 = vpop.f32.mrb[23].mxu1 }
 0x10a   :  { %v795_v20 = vsel %vm667_vm5, %v469_v3, %v731_v13  ;;  %v827_v26 = vsel %vm699_vm6, %v597_v4, %v763_v15  ;;  %v610_v32 = vadd.f32 %v1642_v6, %v1847_v34  ;;  %v474_v33 = vadd.f32 %v1847_v34, %v473_v10 }
 0x10b   :  { %v1407_v25 = vpack.c.bf16 %v795_v20, %v794_v2  ;;  %vm665_vm7 = vcmp.ge.f32.partialorder %v461_v16, 0.0  ;;  %v729_v27 = vmul.f32 0.2, %v461_v16  ;;  %v1487_v28 = vpack.c.bf16 %v827_v26, %v826_v8 }
 0x10c   :  { %vm697_vm8 = vcmp.ge.f32.partialorder %v589_v21, 0.0  ;;  %v761_v29 = vmul.f32 0.2, %v589_v21  ;;  %vm670_vm9 = vcmp.ge.f32.partialorder %v482_v22, 0.0  ;;  %v734_v31 = vmul.f32 0.2, %v482_v22 }
 0x10d   :  { %1527 = vst [vmem:[%s2021_s3 + $0x48] sm:$0xff] %v1407_v25   ;;  %v793_v30 = vsel %vm665_vm7, %v461_v16, %v729_v27  ;;  %1543 = vst [vmem:[%s2021_s3 + $0xc8] sm:$0xff] %v1487_v28   ;;  %v602_v37 = vadd.f32 %v1847_v34, %v601_v11  ;;  %v485_v38 = vadd.f32 %v1611_v17, %v1847_v34  ;;  %v1614_v39 = vpop.f32.mrb[24].mxu0  ;;  %v1646_v40 = vpop.f32.mrb[24].mxu1  ;;  %vm702_vm10 = vcmp.ge.f32.partialorder %v610_v32, 0.0 }
 0x10e   :  { %v1402_v35 = vpack.c.bf16 %v793_v30, %v792_v14  ;;  %v825_v36 = vsel %vm697_vm8, %v589_v21, %v761_v29  ;;  %v766_v42 = vmul.f32 0.2, %v610_v32  ;;  %v489_v43 = vpop.f32.mrb[25].mxu0  ;;  %v617_v44 = vpop.f32.mrb[25].mxu1  ;;  %v798_v45 = vsel %vm670_vm9, %v482_v22, %v734_v31 }
 0x10f   :  { %v1482_v41 = vpack.c.bf16 %v825_v36, %v824_v19  ;;  %vm668_vm11 = vcmp.ge.f32.partialorder %v474_v33, 0.0  ;;  %v732_v46 = vmul.f32 0.2, %v474_v33  ;;  %v764_v47 = vmul.f32 0.2, %v602_v37  ;;  %v1615_v50 = vpop.f32.mrb[26].mxu0 }
 0x110   :  { %1526 = vst [vmem:[%s2021_s3 + $0x40] sm:$0xff] %v1402_v35   ;;  %vm700_vm12 = vcmp.ge.f32.partialorder %v602_v37, 0.0  ;;  %vm671_vm13 = vcmp.ge.f32.partialorder %v485_v38, 0.0  ;;  %v735_v48 = vmul.f32 0.2, %v485_v38  ;;  %v613_v49 = vadd.f32 %v1643_v18, %v1847_v34  ;;  %v1647_v51 = vpop.f32.mrb[26].mxu1 }
 0x111   :  { %1542 = vst [vmem:[%s2021_s3 + $0xc0] sm:$0xff] %v1482_v41   ;;  %v830_v52 = vsel %vm702_vm10, %v610_v32, %v766_v42  ;;  %v796_v53 = vsel %vm668_vm11, %v474_v33, %v732_v46  ;;  %v477_v54 = vadd.f32 %v1847_v34, %v476_v23  ;;  %v605_v55 = vadd.f32 %v1847_v34, %v604_v24  ;;  %v492_v56 = vpop.f32.mrb[27].mxu0  ;;  %v620_v57 = vpop.f32.mrb[27].mxu1 }
 0x112   :  { %v799_v58 = vsel %vm671_vm13, %v485_v38, %v735_v48  ;;  %vm703_vm14 = vcmp.ge.f32.partialorder %v613_v49, 0.0  ;;  %v767_v59 = vmul.f32 0.2, %v613_v49  ;;  %v498_v60 = vadd.f32 %v1614_v39, %v1847_v34 }
 0x113   :  { %v1417_v61 = vpack.c.bf16 %v799_v58, %v798_v45  ;;  %vm669_vm15 = vcmp.ge.f32.partialorder %v477_v54, 0.0  ;;  %v733_v62 = vmul.f32 0.2, %v477_v54  ;;  %vm701_vm0 = vcmp.ge.f32.partialorder %v605_v55, 0.0 }
 0x114   :  { %v831_v63 = vsel %vm703_vm14, %v613_v49, %v767_v59  ;;  %v765_v0 = vmul.f32 0.2, %v605_v55  ;;  %vm674_vm1 = vcmp.ge.f32.partialorder %v498_v60, 0.0  ;;  %v738_v1 = vmul.f32 0.2, %v498_v60 }
 0x115   :  { %1529 = vst [vmem:[%s2021_s3 + $0x58] sm:$0xff] %v1417_v61   ;;  %v1497_v2 = vpack.c.bf16 %v831_v63, %v830_v52  ;;  %v797_v3 = vsel %vm669_vm15, %v477_v54, %v733_v62  ;;  %v626_v4 = vadd.f32 %v1646_v40, %v1847_v34  ;;  %v490_v5 = vadd.f32 %v1847_v34, %v489_v43  ;;  %v1618_v6 = vpop.f32.mrb[28].mxu0  ;;  %v1650_v7 = vpop.f32.mrb[28].mxu1 }
 0x116   :  { %v828_v8 = vsel %vm700_vm12, %v602_v37, %v764_v47  ;;  %v1412_v9 = vpack.c.bf16 %v797_v3, %v796_v53  ;;  %v829_v10 = vsel %vm701_vm0, %v605_v55, %v765_v0  ;;  %v618_v11 = vadd.f32 %v1847_v34, %v617_v44  ;;  %v505_v12 = vpop.f32.mrb[29].mxu0  ;;  %v633_v13 = vpop.f32.mrb[29].mxu1 }
 0x117   :  { %1545 = vst [vmem:[%s2021_s3 + $0xd8] sm:$0xff] %v1497_v2   ;;  %v1492_v14 = vpack.c.bf16 %v829_v10, %v828_v8  ;;  %vm706_vm2 = vcmp.ge.f32.partialorder %v626_v4, 0.0  ;;  %v770_v15 = vmul.f32 0.2, %v626_v4  ;;  %vm672_vm3 = vcmp.ge.f32.partialorder %v490_v5, 0.0  ;;  %v1619_v16 = vpop.f32.mrb[30].mxu0 }
 0x118   :  { %v1651_v17 = vpop.f32.mrb[30].mxu1  ;;  %1528 = vst [vmem:[%s2021_s3 + $0x50] sm:$0xff] %v1412_v9   ;;  %v802_v18 = vsel %vm674_vm1, %v498_v60, %v738_v1  ;;  %v736_v19 = vmul.f32 0.2, %v490_v5  ;;  %vm704_vm4 = vcmp.ge.f32.partialorder %v618_v11, 0.0  ;;  %v501_v20 = vadd.f32 %v1615_v50, %v1847_v34  ;;  %v508_v21 = vpop.f32.mrb[31].mxu0 }
 0x119   :  { %1544 = vst [vmem:[%s2021_s3 + $0xd0] sm:$0xff] %v1492_v14   ;;  %v768_v22 = vmul.f32 0.2, %v618_v11  ;;  %v629_v23 = vadd.f32 %v1647_v51, %v1847_v34  ;;  %v493_v24 = vadd.f32 %v1847_v34, %v492_v56  ;;  %v621_v25 = vadd.f32 %v1847_v34, %v620_v57  ;;  %v636_v26 = vpop.f32.mrb[31].mxu1 }
 0x11a   :  { %v834_v27 = vsel %vm706_vm2, %v626_v4, %v770_v15  ;;  %v800_v28 = vsel %vm672_vm3, %v490_v5, %v736_v19  ;;  %vm675_vm5 = vcmp.ge.f32.partialorder %v501_v20, 0.0  ;;  %v739_v29 = vmul.f32 0.2, %v501_v20 }
 0x11b   :  { %vm707_vm6 = vcmp.ge.f32.partialorder %v629_v23, 0.0  ;;  %v771_v30 = vmul.f32 0.2, %v629_v23  ;;  %vm673_vm7 = vcmp.ge.f32.partialorder %v493_v24, 0.0  ;;  %v737_v31 = vmul.f32 0.2, %v493_v24 }
 0x11c   :  { %v803_v32 = vsel %vm675_vm5, %v501_v20, %v739_v29  ;;  %vm705_vm8 = vcmp.ge.f32.partialorder %v621_v25, 0.0  ;;  %v769_v33 = vmul.f32 0.2, %v621_v25  ;;  %v514_v35 = vadd.f32 %v1618_v6, %v1847_v34 }
 0x11d   :  { %v1427_v36 = vpack.c.bf16 %v803_v32, %v802_v18  ;;  %v835_v37 = vsel %vm707_vm6, %v629_v23, %v771_v30  ;;  %v801_v38 = vsel %vm673_vm7, %v493_v24, %v737_v31  ;;  %v642_v39 = vadd.f32 %v1650_v7, %v1847_v34 }
 0x11e   :  { %v832_v40 = vsel %vm704_vm4, %v618_v11, %v768_v22  ;;  %v1507_v41 = vpack.c.bf16 %v835_v37, %v834_v27  ;;  %v1422_v42 = vpack.c.bf16 %v801_v38, %v800_v28  ;;  %v833_v43 = vsel %vm705_vm8, %v621_v25, %v769_v33 }
 0x11f   :  { %1531 = vst [vmem:[%s2021_s3 + $0x68] sm:$0xff] %v1427_v36   ;;  %v1502_v44 = vpack.c.bf16 %v833_v43, %v832_v40  ;;  %vm678_vm9 = vcmp.ge.f32.partialorder %v514_v35, 0.0  ;;  %v742_v45 = vmul.f32 0.2, %v514_v35  ;;  %v774_v46 = vmul.f32 0.2, %v642_v39 }
 0x120   :  { %1547 = vst [vmem:[%s2021_s3 + $0xe8] sm:$0xff] %v1507_v41   ;;  %1530 = vst [vmem:[%s2021_s3 + $0x60] sm:$0xff] %v1422_v42   ;;  %v506_v47 = vadd.f32 %v1847_v34, %v505_v12  ;;  %v634_v48 = vadd.f32 %v1847_v34, %v633_v13  ;;  %v517_v49 = vadd.f32 %v1619_v16, %v1847_v34  ;;  %vm710_vm10 = vcmp.ge.f32.partialorder %v642_v39, 0.0 }
 0x121   :  { %v645_v50 = vadd.f32 %v1651_v17, %v1847_v34  ;;  %1546 = vst [vmem:[%s2021_s3 + $0xe0] sm:$0xff] %v1502_v44   ;;  %v509_v51 = vadd.f32 %v1847_v34, %v508_v21  ;;  %v637_v52 = vadd.f32 %v1847_v34, %v636_v26  ;;  %v806_v53 = vsel %vm678_vm9, %v514_v35, %v742_v45 }
 0x122   :  { %vm676_vm11 = vcmp.ge.f32.partialorder %v506_v47, 0.0  ;;  %v740_v54 = vmul.f32 0.2, %v506_v47  ;;  %v772_v55 = vmul.f32 0.2, %v634_v48  ;;  %vm679_vm12 = vcmp.ge.f32.partialorder %v517_v49, 0.0 }
 0x123   :  { %v743_v56 = vmul.f32 0.2, %v517_v49  ;;  %vm711_vm13 = vcmp.ge.f32.partialorder %v645_v50, 0.0  ;;  %v775_v57 = vmul.f32 0.2, %v645_v50  ;;  %v838_v58 = vsel %vm710_vm10, %v642_v39, %v774_v46 }
 0x124   :  { %vm708_vm14 = vcmp.ge.f32.partialorder %v634_v48, 0.0  ;;  %vm677_vm15 = vcmp.ge.f32.partialorder %v509_v51, 0.0  ;;  %v741_v59 = vmul.f32 0.2, %v509_v51  ;;  %vm709_vm0 = vcmp.ge.f32.partialorder %v637_v52, 0.0 }
 0x125   :  { %v807_v60 = vsel %vm679_vm12, %v517_v49, %v743_v56  ;;  %v839_v61 = vsel %vm711_vm13, %v645_v50, %v775_v57  ;;  %v773_v62 = vmul.f32 0.2, %v637_v52  ;;  %v804_v63 = vsel %vm676_vm11, %v506_v47, %v740_v54 }
 0x126   :  { %v1437_v0 = vpack.c.bf16 %v807_v60, %v806_v53  ;;  %v1517_v1 = vpack.c.bf16 %v839_v61, %v838_v58  ;;  %v805_v34 = vsel %vm677_vm15, %v509_v51, %v741_v59  ;;  %v836_v2 = vsel %vm708_vm14, %v634_v48, %v772_v55 }
 0x127   :  { %v1432_v3 = vpack.c.bf16 %v805_v34, %v804_v63  ;;  %v837_v4 = vsel %vm709_vm0, %v637_v52, %v773_v62 }
 0x128   :  { %1533 = vst [vmem:[%s2021_s3 + $0x78] sm:$0xff] %v1437_v0   ;;  %1549 = vst [vmem:[%s2021_s3 + $0xf8] sm:$0xff] %v1517_v1   ;;  %v1512_v5 = vpack.c.bf16 %v837_v4, %v836_v2 }
 0x129   :  { %1532 = vst [vmem:[%s2021_s3 + $0x70] sm:$0xff] %v1432_v3  }
 0x12a   :  { %1548 = vst [vmem:[%s2021_s3 + $0xf0] sm:$0xff] %v1512_v5  }

// kernel: _lambda_.6
= control target key start
LH: loop header
LB: loop body
LE: loop exit
PB: predicated region body
PF: predicated region fallthrough
CT: control target
= control target key end

     0   :  { %s672_s1 = inlined_call_operand.vmem [shape: bf16[128,128], index: 1, kind: input, shape index: {}]   ;;  %s673_s0 = inlined_call_operand.vmem [shape: bf16[128,128], index: 0, kind: input, shape index: {}]   ;;  %s674_s2 = inlined_call_operand.vmem [shape: f32[1,128], index: 2, kind: input, shape index: {}]   ;;  %s675_s3 = inlined_call_operand.vmem [shape: bf16[128,128], index: 3, kind: output, shape index: {}]  }
   0x1   :  { %v539_v0 = vld [vmem:[%s672_s1] sm:$0xff]   ;;  %v540_v1 = vld [vmem:[%s672_s1 + $0x8] sm:$0xff]   ;;  %v541_v2 = vld [vmem:[%s672_s1 + $0x10] sm:$0xff]  }
   0x2   :  { %491 = vmatprep.subr.bf16.mxu0 %v539_v0  ;;  %523 = vmatprep.subr.bf16.mxu1 %v539_v0  ;;  %v542_v3 = vld [vmem:[%s672_s1 + $0x18] sm:$0xff]   ;;  %v547_v4 = vld [vmem:[%s673_s0] sm:$0xff]   ;;  %v544_v7 = vld [vmem:[%s672_s1 + $0x28] sm:$0xff]  }
   0x3   :  { %492 = vmatpush3.bf16.msra.mxu0 %v539_v0  ;;  %531 = vmatpush3.bf16.msra.mxu1 %v539_v0  ;;  %v548_v5 = vld [vmem:[%s673_s0 + $0x20] sm:$0xff]   ;;  %v545_v8 = vld [vmem:[%s672_s1 + $0x30] sm:$0xff]   ;;  %v546_v9 = vld [vmem:[%s672_s1 + $0x38] sm:$0xff]  }
   0x4   :  { %493 = vmatprep.subr.bf16.mxu0 %v540_v1  ;;  %524 = vmatprep.subr.bf16.mxu1 %v540_v1  ;;  %v543_v6 = vld [vmem:[%s672_s1 + $0x20] sm:$0xff]   ;;  %v549_v10 = vld [vmem:[%s673_s0 + $0x8] sm:$0xff]   ;;  %v551_v12 = vld [vmem:[%s673_s0 + $0x10] sm:$0xff]  }
   0x5   :  { %507 = vmatprep.mubr.bf16.mxu0 %v547_v4  ;;  %515 = vmatprep.mubr.bf16.mxu1 %v548_v5  ;;  %v550_v11 = vld [vmem:[%s673_s0 + $0x28] sm:$0xff]   ;;  %v552_v13 = vld [vmem:[%s673_s0 + $0x30] sm:$0xff]   ;;  %v553_v14 = vld [vmem:[%s673_s0 + $0x18] sm:$0xff]  }
   0x6   :  { %v554_v15 = vld [vmem:[%s673_s0 + $0x38] sm:$0xff]   ;;  %v626_v16 = vld [vmem:[%s674_s2] ss:$0 sm:$0xff] }
   0x7   :  { %494 = vmatpush3.bf16.msra.mxu0 %v540_v1  ;;  %532 = vmatpush3.bf16.msra.mxu1 %v540_v1 }
   0x8   :  { %495 = vmatprep.subr.bf16.mxu0 %v541_v2  ;;  %525 = vmatprep.subr.bf16.mxu1 %v541_v2 }
   0xb   :  { %496 = vmatpush3.bf16.msra.mxu0 %v541_v2  ;;  %533 = vmatpush3.bf16.msra.mxu1 %v541_v2 }
   0xc   :  { %497 = vmatprep.subr.bf16.mxu0 %v542_v3  ;;  %526 = vmatprep.subr.bf16.mxu1 %v542_v3 }
   0xf   :  { %498 = vmatpush3.bf16.msra.mxu0 %v542_v3  ;;  %534 = vmatpush3.bf16.msra.mxu1 %v542_v3 }
  0x10   :  { %499 = vmatprep.subr.bf16.mxu0 %v543_v6  ;;  %527 = vmatprep.subr.bf16.mxu1 %v543_v6 }
  0x13   :  { %500 = vmatpush3.bf16.msra.mxu0 %v543_v6  ;;  %535 = vmatpush3.bf16.msra.mxu1 %v543_v6 }
  0x14   :  { %501 = vmatprep.subr.bf16.mxu0 %v544_v7  ;;  %528 = vmatprep.subr.bf16.mxu1 %v544_v7 }
  0x17   :  { %502 = vmatpush3.bf16.msra.mxu0 %v544_v7  ;;  %536 = vmatpush3.bf16.msra.mxu1 %v544_v7 }
  0x18   :  { %503 = vmatprep.subr.bf16.mxu0 %v545_v8  ;;  %529 = vmatprep.subr.bf16.mxu1 %v545_v8 }
  0x1b   :  { %504 = vmatpush3.bf16.msra.mxu0 %v545_v8  ;;  %537 = vmatpush3.bf16.msra.mxu1 %v545_v8 }
  0x1c   :  { %505 = vmatprep.subr.bf16.mxu0 %v546_v9  ;;  %530 = vmatprep.subr.bf16.mxu1 %v546_v9 }
  0x1f   :  { %506 = vmatpush3.bf16.msra.mxu0 %v546_v9  ;;  %538 = vmatpush3.bf16.msra.mxu1 %v546_v9 }
  0x22   :  { %508 = vmatmul.mubr.bf16.vlgmr.msra.gmra.mrb[0].mxu0 %v549_v10  ;;  %516 = vmatmul.mubr.bf16.vlgmr.msra.gmra.mrb[0].mxu1 %v550_v11 }
  0x23   :  { %511 = vmatprep.mubr.bf16.mxu0 %v551_v12  ;;  %519 = vmatprep.mubr.bf16.mxu1 %v552_v13 }
  0x2a   :  { %512 = vmatmul.mubr.bf16.gmra.mrb[4].mxu0 %v553_v14  ;;  %520 = vmatmul.mubr.bf16.gmra.mrb[4].mxu1 %v554_v15 }
  0xf5   :  { %v509_v17 = vpop.f32.mrb[0].mxu0  ;;  %v517_v18 = vpop.f32.mrb[0].mxu1 }
  0xf6   :  { %v193_v19 = vadd.f32 %v509_v17, %v626_v16  ;;  %v225_v20 = vadd.f32 %v517_v18, %v626_v16  ;;  %v184_v21 = vpop.f32.mrb[1].mxu0  ;;  %v216_v22 = vpop.f32.mrb[1].mxu1 }
  0xf7   :  { %v185_v23 = vadd.f32 %v626_v16, %v184_v21  ;;  %v217_v24 = vadd.f32 %v626_v16, %v216_v22  ;;  %v510_v25 = vpop.f32.mrb[2].mxu0  ;;  %v518_v26 = vpop.f32.mrb[2].mxu1 }
  0xf8   :  { %vm249_vm0 = vcmp.ge.f32.partialorder %v193_v19, 0.0  ;;  %v265_v27 = vmul.f32 0.2, %v193_v19  ;;  %vm257_vm1 = vcmp.ge.f32.partialorder %v225_v20, 0.0  ;;  %v273_v28 = vmul.f32 0.2, %v225_v20 }
  0xf9   :  { %vm247_vm2 = vcmp.ge.f32.partialorder %v185_v23, 0.0  ;;  %v263_v29 = vmul.f32 0.2, %v185_v23  ;;  %vm255_vm3 = vcmp.ge.f32.partialorder %v217_v24, 0.0  ;;  %v271_v30 = vmul.f32 0.2, %v217_v24 }
  0xfa   :  { %v196_v31 = vadd.f32 %v510_v25, %v626_v16  ;;  %v228_v32 = vadd.f32 %v518_v26, %v626_v16  ;;  %v187_v33 = vpop.f32.mrb[3].mxu0  ;;  %v219_v34 = vpop.f32.mrb[3].mxu1  ;;  %v281_v35 = vsel %vm249_vm0, %v193_v19, %v265_v27  ;;  %v289_v36 = vsel %vm257_vm1, %v225_v20, %v273_v28 }
  0xfb   :  { %v188_v37 = vadd.f32 %v626_v16, %v187_v33  ;;  %v220_v38 = vadd.f32 %v626_v16, %v219_v34  ;;  %v279_v43 = vsel %vm247_vm2, %v185_v23, %v263_v29  ;;  %v287_v44 = vsel %vm255_vm3, %v217_v24, %v271_v30 }
  0xfc   :  { %vm250_vm4 = vcmp.ge.f32.partialorder %v196_v31, 0.0  ;;  %v266_v39 = vmul.f32 0.2, %v196_v31  ;;  %vm258_vm5 = vcmp.ge.f32.partialorder %v228_v32, 0.0  ;;  %v274_v40 = vmul.f32 0.2, %v228_v32 }
  0xfd   :  { %vm248_vm6 = vcmp.ge.f32.partialorder %v188_v37, 0.0  ;;  %v264_v41 = vmul.f32 0.2, %v188_v37  ;;  %vm256_vm7 = vcmp.ge.f32.partialorder %v220_v38, 0.0  ;;  %v272_v42 = vmul.f32 0.2, %v220_v38 }
  0xfe   :  { %v282_v45 = vsel %vm250_vm4, %v196_v31, %v266_v39  ;;  %v290_v46 = vsel %vm258_vm5, %v228_v32, %v274_v40  ;;  %v513_v47 = vpop.f32.mrb[4].mxu0  ;;  %v521_v48 = vpop.f32.mrb[4].mxu1 }
  0xff   :  { %v436_v49 = vpack.c.bf16 %v282_v45, %v281_v35  ;;  %v456_v50 = vpack.c.bf16 %v290_v46, %v289_v36  ;;  %v280_v51 = vsel %vm248_vm6, %v188_v37, %v264_v41  ;;  %v288_v52 = vsel %vm256_vm7, %v220_v38, %v272_v42  ;;  %v200_v53 = vpop.f32.mrb[5].mxu0  ;;  %v232_v54 = vpop.f32.mrb[5].mxu1 }
 0x100   :  { %v431_v55 = vpack.c.bf16 %v280_v51, %v279_v43  ;;  %v451_v56 = vpack.c.bf16 %v288_v52, %v287_v44  ;;  %v209_v57 = vadd.f32 %v513_v47, %v626_v16  ;;  %v241_v58 = vadd.f32 %v521_v48, %v626_v16  ;;  %v514_v59 = vpop.f32.mrb[6].mxu0  ;;  %v522_v60 = vpop.f32.mrb[6].mxu1 }
 0x101   :  { %468 = vst [vmem:[%s675_s3 + $0x8] sm:$0xff] %v436_v49   ;;  %472 = vst [vmem:[%s675_s3 + $0x28] sm:$0xff] %v456_v50   ;;  %v201_v61 = vadd.f32 %v626_v16, %v200_v53  ;;  %v233_v62 = vadd.f32 %v626_v16, %v232_v54  ;;  %v212_v63 = vadd.f32 %v514_v59, %v626_v16  ;;  %v203_v1 = vpop.f32.mrb[7].mxu0  ;;  %v235_v2 = vpop.f32.mrb[7].mxu1 }
 0x102   :  { %v244_v0 = vadd.f32 %v522_v60, %v626_v16  ;;  %432 = vst [vmem:[%s675_s3] sm:$0xff] %v431_v55   ;;  %471 = vst [vmem:[%s675_s3 + $0x20] sm:$0xff] %v451_v56   ;;  %v269_v3 = vmul.f32 0.2, %v209_v57  ;;  %vm253_vm8 = vcmp.ge.f32.partialorder %v209_v57, 0.0  ;;  %v277_v4 = vmul.f32 0.2, %v241_v58 }
 0x103   :  { %vm261_vm9 = vcmp.ge.f32.partialorder %v241_v58, 0.0  ;;  %vm251_vm10 = vcmp.ge.f32.partialorder %v201_v61, 0.0  ;;  %vm254_vm11 = vcmp.ge.f32.partialorder %v212_v63, 0.0  ;;  %v270_v5 = vmul.f32 0.2, %v212_v63 }
 0x104   :  { %v267_v6 = vmul.f32 0.2, %v201_v61  ;;  %vm259_vm12 = vcmp.ge.f32.partialorder %v233_v62, 0.0  ;;  %vm262_vm13 = vcmp.ge.f32.partialorder %v244_v0, 0.0  ;;  %v278_v7 = vmul.f32 0.2, %v244_v0 }
 0x105   :  { %v285_v8 = vsel %vm253_vm8, %v209_v57, %v269_v3  ;;  %v286_v9 = vsel %vm254_vm11, %v212_v63, %v270_v5  ;;  %v204_v10 = vadd.f32 %v626_v16, %v203_v1  ;;  %v236_v11 = vadd.f32 %v626_v16, %v235_v2 }
 0x106   :  { %v293_v12 = vsel %vm261_vm9, %v241_v58, %v277_v4  ;;  %v275_v13 = vmul.f32 0.2, %v233_v62  ;;  %v446_v14 = vpack.c.bf16 %v286_v9, %v285_v8  ;;  %v294_v15 = vsel %vm262_vm13, %v244_v0, %v278_v7 }
 0x107   :  { %v466_v17 = vpack.c.bf16 %v294_v15, %v293_v12  ;;  %vm252_vm14 = vcmp.ge.f32.partialorder %v204_v10, 0.0  ;;  %v268_v18 = vmul.f32 0.2, %v204_v10  ;;  %vm260_vm15 = vcmp.ge.f32.partialorder %v236_v11, 0.0 }
 0x108   :  { %470 = vst [vmem:[%s675_s3 + $0x18] sm:$0xff] %v446_v14   ;;  %v276_v19 = vmul.f32 0.2, %v236_v11  ;;  %v283_v20 = vsel %vm251_vm10, %v201_v61, %v267_v6  ;;  %v291_v21 = vsel %vm259_vm12, %v233_v62, %v275_v13 }
 0x109   :  { %474 = vst [vmem:[%s675_s3 + $0x38] sm:$0xff] %v466_v17   ;;  %v284_v16 = vsel %vm252_vm14, %v204_v10, %v268_v18 }
 0x10a   :  { %v441_v22 = vpack.c.bf16 %v284_v16, %v283_v20  ;;  %v292_v23 = vsel %vm260_vm15, %v236_v11, %v276_v19 }
 0x10b   :  { %v461_v24 = vpack.c.bf16 %v292_v23, %v291_v21 }
 0x10c   :  { %469 = vst [vmem:[%s675_s3 + $0x10] sm:$0xff] %v441_v22  }
 0x10d   :  { %473 = vst [vmem:[%s675_s3 + $0x30] sm:$0xff] %v461_v24  }

// kernel: _lambda_.7
= control target key start
LH: loop header
LB: loop body
LE: loop exit
PB: predicated region body
PF: predicated region fallthrough
CT: control target
= control target key end

     0   :  { %s454_s1 = inlined_call_operand.vmem [shape: bf16[256,128], index: 1, kind: input, shape index: {}]   ;;  %s455_s0 = inlined_call_operand.vmem [shape: bf16[32,256], index: 0, kind: input, shape index: {}]   ;;  %s456_s2 = inlined_call_operand.vmem [shape: f32[1,128], index: 2, kind: input, shape index: {}]   ;;  %s457_s3 = inlined_call_operand.vmem [shape: bf16[32,128], index: 3, kind: output, shape index: {}]  }
   0x1   :  { %v343_v0 = vld [vmem:[%s454_s1 + $0x40] sm:$0xff]   ;;  %v345_v2 = vld [vmem:[%s454_s1 + $0x48] sm:$0xff]   ;;  %v347_v4 = vld [vmem:[%s454_s1 + $0x50] sm:$0xff]  }
   0x2   :  { %v344_v1 = vld [vmem:[%s454_s1] sm:$0xff]   ;;  %299 = vmatprep.subr.bf16.mxu0 %v343_v0  ;;  %327 = vmatprep.subr.bf16.mxu1 %v343_v0  ;;  %v346_v3 = vld [vmem:[%s454_s1 + $0x8] sm:$0xff]   ;;  %v348_v5 = vld [vmem:[%s454_s1 + $0x10] sm:$0xff]  }
   0x3   :  { %300 = vmatpush3.bf16.msra.mxu0 %v344_v1  ;;  %335 = vmatpush3.bf16.msra.mxu1 %v344_v1  ;;  %v349_v6 = vld [vmem:[%s454_s1 + $0x58] sm:$0xff]   ;;  %v351_v8 = vld [vmem:[%s454_s1 + $0x60] sm:$0xff]   ;;  %v353_v10 = vld [vmem:[%s454_s1 + $0x68] sm:$0xff]  }
   0x4   :  { %301 = vmatprep.subr.bf16.mxu0 %v345_v2  ;;  %328 = vmatprep.subr.bf16.mxu1 %v345_v2  ;;  %v350_v7 = vld [vmem:[%s454_s1 + $0x18] sm:$0xff]   ;;  %v352_v9 = vld [vmem:[%s454_s1 + $0x20] sm:$0xff]   ;;  %v354_v13 = vld [vmem:[%s454_s1 + $0x28] sm:$0xff]  }
   0x5   :  { %v361_v11 = vld [vmem:[%s455_s0 + $0x4] ss:$8 sps:$4 sm:$0xff]   ;;  %v364_v12 = vld [vmem:[%s455_s0 + $0x14] ss:$8 sps:$4 sm:$0xff]   ;;  %v359_v18 = vld [vmem:[%s455_s0] ss:$8 sps:$4 sm:$0xff]  }
   0x6   :  { %v355_v14 = vld [vmem:[%s454_s1 + $0x70] sm:$0xff]   ;;  %206 = vmatprep.mubr.bf16.mxu0 %v361_v11  ;;  %214 = vmatprep.mubr.bf16.mxu1 %v364_v12  ;;  %v357_v16 = vld [vmem:[%s454_s1 + $0x78] sm:$0xff]   ;;  %v259_v22 = vld [vmem:[%s456_s2] ss:$0 sm:$0xff] }
   0x7   :  { %302 = vmatpush3.bf16.msra.mxu0 %v346_v3  ;;  %336 = vmatpush3.bf16.msra.mxu1 %v346_v3  ;;  %v356_v15 = vld [vmem:[%s454_s1 + $0x30] sm:$0xff]   ;;  %v358_v17 = vld [vmem:[%s454_s1 + $0x38] sm:$0xff]  }
   0x8   :  { %303 = vmatprep.subr.bf16.mxu0 %v347_v4  ;;  %329 = vmatprep.subr.bf16.mxu1 %v347_v4  ;;  %v362_v19 = vld [vmem:[%s455_s0 + $0x10] ss:$8 sps:$4 sm:$0xff]  }
   0xb   :  { %304 = vmatpush3.bf16.msra.mxu0 %v348_v5  ;;  %337 = vmatpush3.bf16.msra.mxu1 %v348_v5 }
   0xc   :  { %305 = vmatprep.subr.bf16.mxu0 %v349_v6  ;;  %330 = vmatprep.subr.bf16.mxu1 %v349_v6 }
   0xf   :  { %306 = vmatpush3.bf16.msra.mxu0 %v350_v7  ;;  %338 = vmatpush3.bf16.msra.mxu1 %v350_v7 }
  0x10   :  { %307 = vmatprep.subr.bf16.mxu0 %v351_v8  ;;  %331 = vmatprep.subr.bf16.mxu1 %v351_v8 }
  0x13   :  { %308 = vmatpush3.bf16.msra.mxu0 %v352_v9  ;;  %339 = vmatpush3.bf16.msra.mxu1 %v352_v9 }
  0x14   :  { %309 = vmatprep.subr.bf16.mxu0 %v353_v10  ;;  %332 = vmatprep.subr.bf16.mxu1 %v353_v10 }
  0x17   :  { %310 = vmatpush3.bf16.msra.mxu0 %v354_v13  ;;  %340 = vmatpush3.bf16.msra.mxu1 %v354_v13 }
  0x18   :  { %311 = vmatprep.subr.bf16.mxu0 %v355_v14  ;;  %333 = vmatprep.subr.bf16.mxu1 %v355_v14 }
  0x1b   :  { %312 = vmatpush3.bf16.msra.mxu0 %v356_v15  ;;  %341 = vmatpush3.bf16.msra.mxu1 %v356_v15 }
  0x1c   :  { %313 = vmatprep.subr.bf16.mxu0 %v357_v16  ;;  %334 = vmatprep.subr.bf16.mxu1 %v357_v16 }
  0x1f   :  { %314 = vmatpush3.bf16.msra.mxu0 %v358_v17  ;;  %342 = vmatpush3.bf16.msra.mxu1 %v358_v17 }
  0x22   :  { %207 = vmatmul.mubr.bf16.vlgmr.msra.gmra.mrb[0].mxu0 %v359_v18  ;;  %215 = vmatmul.mubr.bf16.vlgmr.msra.gmra.mrb[0].mxu1 %v362_v19 }
  0xf5   :  { %v315_v20 = vpop.f32.mrb[0].mxu0  ;;  %v321_v21 = vpop.f32.mrb[0].mxu1 }
  0xf6   :  { %v316_v23 = vpop.f32.mrb[1].mxu0  ;;  %v322_v24 = vpop.f32.mrb[1].mxu1 }
  0xf7   :  { %v317_v25 = vadd.f32 %v316_v23, %v315_v20  ;;  %v323_v26 = vadd.f32 %v322_v24, %v321_v21  ;;  %v318_v27 = vpop.f32.mrb[2].mxu0  ;;  %v324_v28 = vpop.f32.mrb[2].mxu1 }
  0xf8   :  { %v319_v29 = vpop.f32.mrb[3].mxu0  ;;  %v325_v30 = vpop.f32.mrb[3].mxu1 }
  0xf9   :  { %v209_v31 = vadd.f32 %v317_v25, %v259_v22  ;;  %v217_v32 = vadd.f32 %v323_v26, %v259_v22  ;;  %v320_v33 = vadd.f32 %v319_v29, %v318_v27  ;;  %v326_v34 = vadd.f32 %v325_v30, %v324_v28 }
  0xfb   :  { %v227_v35 = vmul.f32 0.2, %v209_v31  ;;  %v229_v36 = vmul.f32 0.2, %v217_v32  ;;  %v212_v37 = vadd.f32 %v320_v33, %v259_v22  ;;  %v220_v38 = vadd.f32 %v326_v34, %v259_v22 }
  0xfc   :  { %vm223_vm0 = vcmp.ge.f32.partialorder %v209_v31, 0.0  ;;  %vm225_vm1 = vcmp.ge.f32.partialorder %v217_v32, 0.0 }
  0xfd   :  { %vm224_vm2 = vcmp.ge.f32.partialorder %v212_v37, 0.0  ;;  %v228_v39 = vmul.f32 0.2, %v212_v37  ;;  %vm226_vm3 = vcmp.ge.f32.partialorder %v220_v38, 0.0  ;;  %v230_v40 = vmul.f32 0.2, %v220_v38 }
  0xfe   :  { %v231_v41 = vsel %vm223_vm0, %v209_v31, %v227_v35  ;;  %v233_v42 = vsel %vm225_vm1, %v217_v32, %v229_v36 }
  0xff   :  { %v232_v43 = vsel %vm224_vm2, %v212_v37, %v228_v39  ;;  %v234_v44 = vsel %vm226_vm3, %v220_v38, %v230_v40 }
 0x100   :  { %v291_v45 = vpack.c.bf16 %v232_v43, %v231_v41  ;;  %v296_v46 = vpack.c.bf16 %v234_v44, %v233_v42 }
 0x102   :  { %292 = vst [vmem:[%s457_s3] sm:$0xff] %v291_v45   ;;  %298 = vst [vmem:[%s457_s3 + $0x8] sm:$0xff] %v296_v46  }

// kernel: _lambda_.8
= control target key start
LH: loop header
LB: loop body
LE: loop exit
PB: predicated region body
PF: predicated region fallthrough
CT: control target
= control target key end

     0   :  { %s769_s1 = inlined_call_operand.vmem [shape: bf16[512,128], index: 1, kind: input, shape index: {}]   ;;  %s770_s0 = inlined_call_operand.vmem [shape: bf16[32,512], index: 0, kind: input, shape index: {}]   ;;  %s771_s2 = inlined_call_operand.vmem [shape: f32[1,128], index: 2, kind: input, shape index: {}]   ;;  %s772_s3 = inlined_call_operand.vmem [shape: bf16[32,128], index: 3, kind: output, shape index: {}]  }
   0x1   :  { %v576_v0 = vld [vmem:[%s769_s1 + $0x40] sm:$0xff]   ;;  %v580_v4 = vld [vmem:[%s769_s1 + $0x48] sm:$0xff]   ;;  %v584_v8 = vld [vmem:[%s769_s1 + $0x50] sm:$0xff]  }
   0x2   :  { %v577_v1 = vld [vmem:[%s769_s1 + $0xc0] sm:$0xff]   ;;  %520 = vmatprep.subr.bf16.mxu0 %v576_v0  ;;  %v581_v5 = vld [vmem:[%s769_s1 + $0xc8] sm:$0xff]   ;;  %v585_v9 = vld [vmem:[%s769_s1 + $0xd0] sm:$0xff]  }
   0x3   :  { %v578_v2 = vld [vmem:[%s769_s1] sm:$0xff]   ;;  %548 = vmatprep.subr.bf16.mxu1 %v577_v1  ;;  %v582_v6 = vld [vmem:[%s769_s1 + $0x8] sm:$0xff]   ;;  %v586_v10 = vld [vmem:[%s769_s1 + $0x10] sm:$0xff]  }
   0x4   :  { %v579_v3 = vld [vmem:[%s769_s1 + $0x80] sm:$0xff]   ;;  %521 = vmatpush3.bf16.msra.mxu0 %v578_v2  ;;  %v583_v7 = vld [vmem:[%s769_s1 + $0x88] sm:$0xff]   ;;  %v587_v11 = vld [vmem:[%s769_s1 + $0x90] sm:$0xff]  }
   0x5   :  { %549 = vmatpush3.bf16.msra.mxu1 %v579_v3  ;;  %522 = vmatprep.subr.bf16.mxu0 %v580_v4  ;;  %v588_v12 = vld [vmem:[%s769_s1 + $0x58] sm:$0xff]   ;;  %v592_v16 = vld [vmem:[%s769_s1 + $0x60] sm:$0xff]   ;;  %v596_v20 = vld [vmem:[%s769_s1 + $0x68] sm:$0xff]  }
   0x6   :  { %550 = vmatprep.subr.bf16.mxu1 %v581_v5  ;;  %v589_v13 = vld [vmem:[%s769_s1 + $0xd8] sm:$0xff]   ;;  %v593_v17 = vld [vmem:[%s769_s1 + $0xe0] sm:$0xff]   ;;  %v597_v21 = vld [vmem:[%s769_s1 + $0xe8] sm:$0xff]  }
   0x7   :  { %v590_v14 = vld [vmem:[%s769_s1 + $0x18] sm:$0xff]   ;;  %v594_v18 = vld [vmem:[%s769_s1 + $0x20] sm:$0xff]   ;;  %v598_v22 = vld [vmem:[%s769_s1 + $0x28] sm:$0xff]  }
   0x8   :  { %523 = vmatpush3.bf16.msra.mxu0 %v582_v6  ;;  %v591_v15 = vld [vmem:[%s769_s1 + $0x98] sm:$0xff]   ;;  %v595_v19 = vld [vmem:[%s769_s1 + $0xa0] sm:$0xff]   ;;  %v599_v23 = vld [vmem:[%s769_s1 + $0xa8] sm:$0xff]  }
   0x9   :  { %551 = vmatpush3.bf16.msra.mxu1 %v583_v7  ;;  %524 = vmatprep.subr.bf16.mxu0 %v584_v8  ;;  %v600_v24 = vld [vmem:[%s769_s1 + $0x70] sm:$0xff]   ;;  %v604_v28 = vld [vmem:[%s769_s1 + $0x78] sm:$0xff]   ;;  %v460_v42 = vld [vmem:[%s771_s2] ss:$0 sm:$0xff] }
   0xa   :  { %552 = vmatprep.subr.bf16.mxu1 %v585_v9  ;;  %v601_v25 = vld [vmem:[%s769_s1 + $0xf0] sm:$0xff]   ;;  %v605_v29 = vld [vmem:[%s769_s1 + $0xf8] sm:$0xff]  }
   0xb   :  { %v602_v26 = vld [vmem:[%s769_s1 + $0x30] sm:$0xff]   ;;  %v606_v30 = vld [vmem:[%s769_s1 + $0x38] sm:$0xff]  }
   0xc   :  { %525 = vmatpush3.bf16.msra.mxu0 %v586_v10  ;;  %v603_v27 = vld [vmem:[%s769_s1 + $0xb0] sm:$0xff]   ;;  %v607_v31 = vld [vmem:[%s769_s1 + $0xb8] sm:$0xff]  }
   0xd   :  { %553 = vmatpush3.bf16.msra.mxu1 %v587_v11  ;;  %526 = vmatprep.subr.bf16.mxu0 %v588_v12  ;;  %v608_v32 = vld [vmem:[%s770_s0] ss:$16 sps:$4 sm:$0xff]   ;;  %v610_v33 = vld [vmem:[%s770_s0 + $0x4] ss:$16 sps:$4 sm:$0xff]   ;;  %v611_v34 = vld [vmem:[%s770_s0 + $0x8] ss:$16 sps:$4 sm:$0xff]  }
   0xe   :  { %554 = vmatprep.subr.bf16.mxu1 %v589_v13  ;;  %v613_v35 = vld [vmem:[%s770_s0 + $0xc] ss:$16 sps:$4 sm:$0xff]   ;;  %358 = vmatprep.mubr.bf16.mxu0 %v610_v33  ;;  %v614_v36 = vld [vmem:[%s770_s0 + $0x24] ss:$16 sps:$4 sm:$0xff]   ;;  %v618_v38 = vld [vmem:[%s770_s0 + $0x20] ss:$16 sps:$4 sm:$0xff]  }
   0xf   :  { %407 = vmatprep.mubr.bf16.mxu1 %v613_v35  ;;  %v616_v37 = vld [vmem:[%s770_s0 + $0x2c] ss:$16 sps:$4 sm:$0xff]   ;;  %v619_v39 = vld [vmem:[%s770_s0 + $0x28] ss:$16 sps:$4 sm:$0xff]  }
  0x10   :  { %527 = vmatpush3.bf16.msra.mxu0 %v590_v14 }
  0x11   :  { %555 = vmatpush3.bf16.msra.mxu1 %v591_v15  ;;  %528 = vmatprep.subr.bf16.mxu0 %v592_v16 }
  0x12   :  { %556 = vmatprep.subr.bf16.mxu1 %v593_v17 }
  0x14   :  { %529 = vmatpush3.bf16.msra.mxu0 %v594_v18 }
  0x15   :  { %557 = vmatpush3.bf16.msra.mxu1 %v595_v19  ;;  %530 = vmatprep.subr.bf16.mxu0 %v596_v20 }
  0x16   :  { %558 = vmatprep.subr.bf16.mxu1 %v597_v21 }
  0x18   :  { %531 = vmatpush3.bf16.msra.mxu0 %v598_v22 }
  0x19   :  { %559 = vmatpush3.bf16.msra.mxu1 %v599_v23  ;;  %532 = vmatprep.subr.bf16.mxu0 %v600_v24 }
  0x1a   :  { %560 = vmatprep.subr.bf16.mxu1 %v601_v25 }
  0x1c   :  { %533 = vmatpush3.bf16.msra.mxu0 %v602_v26 }
  0x1d   :  { %561 = vmatpush3.bf16.msra.mxu1 %v603_v27  ;;  %534 = vmatprep.subr.bf16.mxu0 %v604_v28 }
  0x1e   :  { %562 = vmatprep.subr.bf16.mxu1 %v605_v29 }
  0x20   :  { %535 = vmatpush3.bf16.msra.mxu0 %v606_v30 }
  0x21   :  { %563 = vmatpush3.bf16.msra.mxu1 %v607_v31 }
  0x23   :  { %359 = vmatmul.mubr.bf16.vlgmr.msra.gmra.mrb[0].mxu0 %v608_v32 }
  0x24   :  { %408 = vmatmul.mubr.bf16.vlgmr.msra.gmra.mrb[0].mxu1 %v611_v34  ;;  %366 = vmatprep.mubr.bf16.mxu0 %v614_v36 }
  0x25   :  { %415 = vmatprep.mubr.bf16.mxu1 %v616_v37 }
  0x2b   :  { %367 = vmatmul.mubr.bf16.gmra.mrb[4].mxu0 %v618_v38 }
  0x2c   :  { %416 = vmatmul.mubr.bf16.gmra.mrb[4].mxu1 %v619_v39 }
  0xf6   :  { %v536_v40 = vpop.f32.mrb[0].mxu0 }
  0xf7   :  { %v564_v41 = vpop.f32.mrb[0].mxu1  ;;  %v537_v43 = vpop.f32.mrb[1].mxu0 }
  0xf8   :  { %v538_v44 = vadd.f32 %v537_v43, %v536_v40  ;;  %v565_v45 = vpop.f32.mrb[1].mxu1  ;;  %v539_v46 = vpop.f32.mrb[2].mxu0 }
  0xf9   :  { %v566_v47 = vadd.f32 %v565_v45, %v564_v41  ;;  %v567_v48 = vpop.f32.mrb[2].mxu1  ;;  %v540_v49 = vpop.f32.mrb[3].mxu0 }
  0xfa   :  { %v361_v50 = vadd.f32 %v538_v44, %v460_v42  ;;  %v541_v51 = vadd.f32 %v540_v49, %v539_v46  ;;  %v568_v52 = vpop.f32.mrb[3].mxu1 }
  0xfb   :  { %v569_v53 = vadd.f32 %v568_v52, %v567_v48 }
  0xfc   :  { %v410_v54 = vadd.f32 %v566_v47, %v361_v50  ;;  %v364_v55 = vadd.f32 %v541_v51, %v460_v42 }
  0xfe   :  { %v428_v56 = vmul.f32 0.2, %v410_v54  ;;  %v413_v57 = vadd.f32 %v569_v53, %v364_v55  ;;  %v542_v58 = vpop.f32.mrb[4].mxu0  ;;  %vm424_vm0 = vcmp.ge.f32.partialorder %v410_v54, 0.0 }
  0xff   :  { %v570_v59 = vpop.f32.mrb[4].mxu1  ;;  %v543_v60 = vpop.f32.mrb[5].mxu0 }
 0x100   :  { %vm425_vm1 = vcmp.ge.f32.partialorder %v413_v57, 0.0  ;;  %v429_v61 = vmul.f32 0.2, %v413_v57  ;;  %v544_v62 = vadd.f32 %v543_v60, %v542_v58  ;;  %v571_v63 = vpop.f32.mrb[5].mxu1  ;;  %v545_v0 = vpop.f32.mrb[6].mxu0  ;;  %v432_v4 = vsel %vm424_vm0, %v410_v54, %v428_v56 }
 0x101   :  { %v572_v1 = vadd.f32 %v571_v63, %v570_v59  ;;  %v573_v2 = vpop.f32.mrb[6].mxu1  ;;  %v546_v3 = vpop.f32.mrb[7].mxu0 }
 0x102   :  { %v433_v5 = vsel %vm425_vm1, %v413_v57, %v429_v61  ;;  %v369_v6 = vadd.f32 %v544_v62, %v460_v42  ;;  %v547_v7 = vadd.f32 %v546_v3, %v545_v0  ;;  %v574_v8 = vpop.f32.mrb[7].mxu1 }
 0x103   :  { %v512_v9 = vpack.c.bf16 %v433_v5, %v432_v4  ;;  %v575_v10 = vadd.f32 %v574_v8, %v573_v2 }
 0x104   :  { %v418_v11 = vadd.f32 %v572_v1, %v369_v6  ;;  %v372_v12 = vadd.f32 %v547_v7, %v460_v42 }
 0x105   :  { %513 = vst [vmem:[%s772_s3] sm:$0xff] %v512_v9  }
 0x106   :  { %v430_v13 = vmul.f32 0.2, %v418_v11  ;;  %v421_v14 = vadd.f32 %v575_v10, %v372_v12  ;;  %vm426_vm2 = vcmp.ge.f32.partialorder %v418_v11, 0.0 }
 0x108   :  { %vm427_vm3 = vcmp.ge.f32.partialorder %v421_v14, 0.0  ;;  %v431_v15 = vmul.f32 0.2, %v421_v14  ;;  %v434_v16 = vsel %vm426_vm2, %v418_v11, %v430_v13 }
 0x10a   :  { %v435_v17 = vsel %vm427_vm3, %v421_v14, %v431_v15 }
 0x10b   :  { %v517_v18 = vpack.c.bf16 %v435_v17, %v434_v16 }
 0x10d   :  { %519 = vst [vmem:[%s772_s3 + $0x8] sm:$0xff] %v517_v18  }

// kernel: _lambda_.9
= control target key start
LH: loop header
LB: loop body
LE: loop exit
PB: predicated region body
PF: predicated region fallthrough
CT: control target
= control target key end

     0   :  { %s1222_s1 = inlined_call_operand.vmem [shape: bf16[1024,128], index: 1, kind: input, shape index: {}]   ;;  %s1223_s0 = inlined_call_operand.vmem [shape: bf16[16,1024], index: 0, kind: input, shape index: {}]   ;;  %s1224_s2 = inlined_call_operand.vmem [shape: f32[1,128], index: 2, kind: input, shape index: {}]   ;;  %s1225_s3 = inlined_call_operand.vmem [shape: f32[16,128], index: 3, kind: output, shape index: {}]  }
   0x1   :  { %v913_v0 = vld [vmem:[%s1222_s1 + $0x40] sm:$0xff]   ;;  %v917_v4 = vld [vmem:[%s1222_s1 + $0x48] sm:$0xff]   ;;  %v921_v8 = vld [vmem:[%s1222_s1 + $0x50] sm:$0xff]  }
   0x2   :  { %v914_v1 = vld [vmem:[%s1222_s1 + $0xc0] sm:$0xff]   ;;  %825 = vmatprep.subr.bf16.mxu0 %v913_v0  ;;  %v918_v5 = vld [vmem:[%s1222_s1 + $0xc8] sm:$0xff]   ;;  %v922_v9 = vld [vmem:[%s1222_s1 + $0xd0] sm:$0xff]  }
   0x3   :  { %v915_v2 = vld [vmem:[%s1222_s1] sm:$0xff]   ;;  %847 = vmatprep.subr.bf16.mxu1 %v914_v1  ;;  %v919_v6 = vld [vmem:[%s1222_s1 + $0x8] sm:$0xff]   ;;  %v923_v10 = vld [vmem:[%s1222_s1 + $0x10] sm:$0xff]  }
   0x4   :  { %v916_v3 = vld [vmem:[%s1222_s1 + $0x80] sm:$0xff]   ;;  %826 = vmatpush3.bf16.msra.mxu0 %v915_v2  ;;  %v920_v7 = vld [vmem:[%s1222_s1 + $0x88] sm:$0xff]   ;;  %v924_v11 = vld [vmem:[%s1222_s1 + $0x90] sm:$0xff]  }
   0x5   :  { %848 = vmatpush3.bf16.msra.mxu1 %v916_v3  ;;  %827 = vmatprep.subr.bf16.mxu0 %v917_v4  ;;  %v925_v12 = vld [vmem:[%s1222_s1 + $0x58] sm:$0xff]   ;;  %v929_v16 = vld [vmem:[%s1222_s1 + $0x60] sm:$0xff]   ;;  %v933_v20 = vld [vmem:[%s1222_s1 + $0x68] sm:$0xff]  }
   0x6   :  { %849 = vmatprep.subr.bf16.mxu1 %v918_v5  ;;  %v926_v13 = vld [vmem:[%s1222_s1 + $0xd8] sm:$0xff]   ;;  %v930_v17 = vld [vmem:[%s1222_s1 + $0xe0] sm:$0xff]   ;;  %v934_v21 = vld [vmem:[%s1222_s1 + $0xe8] sm:$0xff]  }
   0x7   :  { %v927_v14 = vld [vmem:[%s1222_s1 + $0x18] sm:$0xff]   ;;  %v931_v18 = vld [vmem:[%s1222_s1 + $0x20] sm:$0xff]   ;;  %v935_v22 = vld [vmem:[%s1222_s1 + $0x28] sm:$0xff]  }
   0x8   :  { %828 = vmatpush3.bf16.msra.mxu0 %v919_v6  ;;  %v928_v15 = vld [vmem:[%s1222_s1 + $0x98] sm:$0xff]   ;;  %v932_v19 = vld [vmem:[%s1222_s1 + $0xa0] sm:$0xff]   ;;  %v936_v23 = vld [vmem:[%s1222_s1 + $0xa8] sm:$0xff]  }
   0x9   :  { %850 = vmatpush3.bf16.msra.mxu1 %v920_v7  ;;  %829 = vmatprep.subr.bf16.mxu0 %v921_v8  ;;  %v937_v24 = vld [vmem:[%s1222_s1 + $0x70] sm:$0xff]   ;;  %v941_v28 = vld [vmem:[%s1222_s1 + $0x78] sm:$0xff]   ;;  %v15_v32 = vld [vmem:[%s1223_s0] sm:$0xff] }
   0xa   :  { %851 = vmatprep.subr.bf16.mxu1 %v922_v9  ;;  %v938_v25 = vld [vmem:[%s1222_s1 + $0xf0] sm:$0xff]   ;;  %v942_v29 = vld [vmem:[%s1222_s1 + $0xf8] sm:$0xff]   ;;  %v19_v33 = vld [vmem:[%s1223_s0 + $0x20] sm:$0xff] }
   0xb   :  { %v939_v26 = vld [vmem:[%s1222_s1 + $0x30] sm:$0xff]   ;;  %v943_v30 = vld [vmem:[%s1222_s1 + $0x38] sm:$0xff]   ;;  %v16_v34 = vld [vmem:[%s1223_s0 + $0x8] sm:$0xff]  ;;  %v753_v35 = vcombine.low %v15_v32, %v19_v33  ;;  %v754_v36 = vcombine.high %v15_v32, %v19_v33 }
   0xc   :  { %830 = vmatpush3.bf16.msra.mxu0 %v923_v10  ;;  %v940_v27 = vld [vmem:[%s1222_s1 + $0xb0] sm:$0xff]   ;;  %v944_v31 = vld [vmem:[%s1222_s1 + $0xb8] sm:$0xff]   ;;  %v20_v37 = vld [vmem:[%s1223_s0 + $0x28] sm:$0xff] }
   0xd   :  { %852 = vmatpush3.bf16.msra.mxu1 %v924_v11  ;;  %831 = vmatprep.subr.bf16.mxu0 %v925_v12  ;;  %v755_v38 = vcombine.low %v16_v34, %v20_v37  ;;  %v756_v39 = vcombine.high %v16_v34, %v20_v37  ;;  %v945_v40 = vld [vmem:[%s1222_s1 + $0x140] sm:$0xff]   ;;  %v949_v44 = vld [vmem:[%s1222_s1 + $0x148] sm:$0xff]   ;;  %v953_v48 = vld [vmem:[%s1222_s1 + $0x150] sm:$0xff]  }
   0xe   :  { %853 = vmatprep.subr.bf16.mxu1 %v926_v13  ;;  %614 = vmatprep.mubr.bf16.mxu0 %v754_v36  ;;  %v946_v41 = vld [vmem:[%s1222_s1 + $0x1c0] sm:$0xff]   ;;  %v950_v45 = vld [vmem:[%s1222_s1 + $0x1c8] sm:$0xff]   ;;  %v954_v49 = vld [vmem:[%s1222_s1 + $0x1d0] sm:$0xff]  }
   0xf   :  { %655 = vmatprep.mubr.bf16.mxu1 %v756_v39  ;;  %v947_v42 = vld [vmem:[%s1222_s1 + $0x100] sm:$0xff]   ;;  %v951_v46 = vld [vmem:[%s1222_s1 + $0x108] sm:$0xff]   ;;  %v955_v50 = vld [vmem:[%s1222_s1 + $0x110] sm:$0xff]  }
  0x10   :  { %832 = vmatpush3.bf16.msra.mxu0 %v927_v14  ;;  %v948_v43 = vld [vmem:[%s1222_s1 + $0x180] sm:$0xff]   ;;  %v952_v47 = vld [vmem:[%s1222_s1 + $0x188] sm:$0xff]   ;;  %v956_v51 = vld [vmem:[%s1222_s1 + $0x190] sm:$0xff]  }
  0x11   :  { %854 = vmatpush3.bf16.msra.mxu1 %v928_v15  ;;  %833 = vmatprep.subr.bf16.mxu0 %v929_v16  ;;  %v957_v52 = vld [vmem:[%s1222_s1 + $0x158] sm:$0xff]   ;;  %v961_v56 = vld [vmem:[%s1222_s1 + $0x160] sm:$0xff]   ;;  %v965_v60 = vld [vmem:[%s1222_s1 + $0x168] sm:$0xff]  }
  0x12   :  { %855 = vmatprep.subr.bf16.mxu1 %v930_v17  ;;  %v958_v53 = vld [vmem:[%s1222_s1 + $0x1d8] sm:$0xff]   ;;  %v962_v57 = vld [vmem:[%s1222_s1 + $0x1e0] sm:$0xff]   ;;  %v966_v61 = vld [vmem:[%s1222_s1 + $0x1e8] sm:$0xff]  }
  0x13   :  { %v959_v54 = vld [vmem:[%s1222_s1 + $0x118] sm:$0xff]   ;;  %v963_v58 = vld [vmem:[%s1222_s1 + $0x120] sm:$0xff]   ;;  %v967_v62 = vld [vmem:[%s1222_s1 + $0x128] sm:$0xff]  }
  0x14   :  { %834 = vmatpush3.bf16.msra.mxu0 %v931_v18  ;;  %v960_v55 = vld [vmem:[%s1222_s1 + $0x198] sm:$0xff]   ;;  %v964_v59 = vld [vmem:[%s1222_s1 + $0x1a0] sm:$0xff]   ;;  %v968_v63 = vld [vmem:[%s1222_s1 + $0x1a8] sm:$0xff]  }
  0x15   :  { %856 = vmatpush3.bf16.msra.mxu1 %v932_v19  ;;  %835 = vmatprep.subr.bf16.mxu0 %v933_v20  ;;  %v969_v0 = vld [vmem:[%s1222_s1 + $0x170] sm:$0xff]   ;;  %v973_v4 = vld [vmem:[%s1222_s1 + $0x178] sm:$0xff]   ;;  %v752_v18 = vld [vmem:[%s1224_s2] ss:$0 sm:$0xff] }
  0x16   :  { %857 = vmatprep.subr.bf16.mxu1 %v934_v21  ;;  %v970_v1 = vld [vmem:[%s1222_s1 + $0x1f0] sm:$0xff]   ;;  %v974_v5 = vld [vmem:[%s1222_s1 + $0x1f8] sm:$0xff]  }
  0x17   :  { %v971_v2 = vld [vmem:[%s1222_s1 + $0x130] sm:$0xff]   ;;  %v975_v6 = vld [vmem:[%s1222_s1 + $0x138] sm:$0xff]  }
  0x18   :  { %836 = vmatpush3.bf16.msra.mxu0 %v935_v22  ;;  %v972_v3 = vld [vmem:[%s1222_s1 + $0x1b0] sm:$0xff]   ;;  %v976_v7 = vld [vmem:[%s1222_s1 + $0x1b8] sm:$0xff]  }
  0x19   :  { %858 = vmatpush3.bf16.msra.mxu1 %v936_v23  ;;  %837 = vmatprep.subr.bf16.mxu0 %v937_v24  ;;  %v17_v8 = vld [vmem:[%s1223_s0 + $0x10] sm:$0xff]  ;;  %v18_v12 = vld [vmem:[%s1223_s0 + $0x18] sm:$0xff] }
  0x1a   :  { %859 = vmatprep.subr.bf16.mxu1 %v938_v25  ;;  %v21_v9 = vld [vmem:[%s1223_s0 + $0x30] sm:$0xff]  ;;  %v22_v13 = vld [vmem:[%s1223_s0 + $0x38] sm:$0xff] }
  0x1b   :  { %v757_v10 = vcombine.low %v17_v8, %v21_v9  ;;  %v758_v11 = vcombine.high %v17_v8, %v21_v9  ;;  %v759_v14 = vcombine.low %v18_v12, %v22_v13  ;;  %v760_v15 = vcombine.high %v18_v12, %v22_v13 }
  0x1c   :  { %838 = vmatpush3.bf16.msra.mxu0 %v939_v26 }
  0x1d   :  { %860 = vmatpush3.bf16.msra.mxu1 %v940_v27  ;;  %839 = vmatprep.subr.bf16.mxu0 %v941_v28 }
  0x1e   :  { %861 = vmatprep.subr.bf16.mxu1 %v942_v29 }
  0x20   :  { %840 = vmatpush3.bf16.msra.mxu0 %v943_v30 }
  0x21   :  { %862 = vmatpush3.bf16.msra.mxu1 %v944_v31  ;;  %869 = vmatprep.subr.bf16.mxu0 %v945_v40 }
  0x22   :  { %891 = vmatprep.subr.bf16.mxu1 %v946_v41 }
  0x23   :  { %615 = vmatmul.mubr.bf16.vlgmr.msra.gmra.mrb[0].mxu0 %v753_v35 }
  0x24   :  { %656 = vmatmul.mubr.bf16.vlgmr.msra.gmra.mrb[0].mxu1 %v755_v38  ;;  %870 = vmatpush3.bf16.msra.mxu0 %v947_v42 }
  0x25   :  { %892 = vmatpush3.bf16.msra.mxu1 %v948_v43  ;;  %871 = vmatprep.subr.bf16.mxu0 %v949_v44 }
  0x26   :  { %893 = vmatprep.subr.bf16.mxu1 %v950_v45  ;;  %696 = vmatprep.mubr.bf16.mxu0 %v758_v11 }
  0x27   :  { %737 = vmatprep.mubr.bf16.mxu1 %v760_v15 }
  0x28   :  { %872 = vmatpush3.bf16.msra.mxu0 %v951_v46 }
  0x29   :  { %894 = vmatpush3.bf16.msra.mxu1 %v952_v47  ;;  %873 = vmatprep.subr.bf16.mxu0 %v953_v48 }
  0x2a   :  { %895 = vmatprep.subr.bf16.mxu1 %v954_v49 }
  0x2c   :  { %874 = vmatpush3.bf16.msra.mxu0 %v955_v50 }
  0x2d   :  { %896 = vmatpush3.bf16.msra.mxu1 %v956_v51  ;;  %875 = vmatprep.subr.bf16.mxu0 %v957_v52 }
  0x2e   :  { %897 = vmatprep.subr.bf16.mxu1 %v958_v53 }
  0x30   :  { %876 = vmatpush3.bf16.msra.mxu0 %v959_v54 }
  0x31   :  { %898 = vmatpush3.bf16.msra.mxu1 %v960_v55  ;;  %877 = vmatprep.subr.bf16.mxu0 %v961_v56 }
  0x32   :  { %899 = vmatprep.subr.bf16.mxu1 %v962_v57 }
  0x34   :  { %878 = vmatpush3.bf16.msra.mxu0 %v963_v58 }
  0x35   :  { %900 = vmatpush3.bf16.msra.mxu1 %v964_v59  ;;  %879 = vmatprep.subr.bf16.mxu0 %v965_v60 }
  0x36   :  { %901 = vmatprep.subr.bf16.mxu1 %v966_v61 }
  0x38   :  { %880 = vmatpush3.bf16.msra.mxu0 %v967_v62 }
  0x39   :  { %902 = vmatpush3.bf16.msra.mxu1 %v968_v63  ;;  %881 = vmatprep.subr.bf16.mxu0 %v969_v0 }
  0x3a   :  { %903 = vmatprep.subr.bf16.mxu1 %v970_v1 }
  0x3c   :  { %882 = vmatpush3.bf16.msra.mxu0 %v971_v2 }
  0x3d   :  { %904 = vmatpush3.bf16.msra.mxu1 %v972_v3  ;;  %883 = vmatprep.subr.bf16.mxu0 %v973_v4 }
  0x3e   :  { %905 = vmatprep.subr.bf16.mxu1 %v974_v5 }
  0x40   :  { %884 = vmatpush3.bf16.msra.mxu0 %v975_v6 }
  0x41   :  { %906 = vmatpush3.bf16.msra.mxu1 %v976_v7 }
  0x43   :  { %697 = vmatmul.mubr.bf16.vlgmr.msra.gmra.mrb[4].mxu0 %v757_v10 }
  0x44   :  { %738 = vmatmul.mubr.bf16.vlgmr.msra.gmra.mrb[4].mxu1 %v759_v14 }
  0xf6   :  { %v841_v16 = vpop.f32.mrb[0].mxu0 }
  0xf7   :  { %v863_v17 = vpop.f32.mrb[0].mxu1  ;;  %v842_v19 = vpop.f32.mrb[1].mxu0 }
  0xf8   :  { %v843_v20 = vadd.f32 %v842_v19, %v841_v16  ;;  %v864_v21 = vpop.f32.mrb[1].mxu1  ;;  %v844_v22 = vpop.f32.mrb[2].mxu0 }
  0xf9   :  { %v865_v23 = vadd.f32 %v864_v21, %v863_v17  ;;  %v866_v24 = vpop.f32.mrb[2].mxu1  ;;  %v845_v25 = vpop.f32.mrb[3].mxu0 }
  0xfa   :  { %v617_v26 = vadd.f32 %v843_v20, %v752_v18  ;;  %v846_v27 = vadd.f32 %v845_v25, %v844_v22  ;;  %v867_v28 = vpop.f32.mrb[3].mxu1 }
  0xfb   :  { %v868_v29 = vadd.f32 %v867_v28, %v866_v24 }
  0xfc   :  { %v658_v30 = vadd.f32 %v865_v23, %v617_v26  ;;  %v620_v31 = vadd.f32 %v846_v27, %v752_v18 }
  0xfe   :  { %v661_v32 = vadd.f32 %v868_v29, %v620_v31 }
 0x116   :  { %v885_v33 = vpop.f32.mrb[4].mxu0 }
 0x117   :  { %v907_v34 = vpop.f32.mrb[4].mxu1  ;;  %v886_v35 = vpop.f32.mrb[5].mxu0 }
 0x118   :  { %v887_v36 = vadd.f32 %v886_v35, %v885_v33  ;;  %v908_v37 = vpop.f32.mrb[5].mxu1  ;;  %v888_v38 = vpop.f32.mrb[6].mxu0 }
 0x119   :  { %v909_v39 = vadd.f32 %v908_v37, %v907_v34  ;;  %v910_v40 = vpop.f32.mrb[6].mxu1  ;;  %v889_v41 = vpop.f32.mrb[7].mxu0 }
 0x11a   :  { %v699_v42 = vadd.f32 %v887_v36, %v658_v30  ;;  %v890_v43 = vadd.f32 %v889_v41, %v888_v38  ;;  %v911_v44 = vpop.f32.mrb[7].mxu1 }
 0x11b   :  { %v912_v45 = vadd.f32 %v911_v44, %v910_v40 }
 0x11c   :  { %v740_v46 = vadd.f32 %v909_v39, %v699_v42  ;;  %v702_v47 = vadd.f32 %v890_v43, %v661_v32 }
 0x11e   :  { %746 = vst [vmem:[%s1225_s3] sm:$0xff] %v740_v46  ;;  %v743_v48 = vadd.f32 %v912_v45, %v702_v47 }
 0x120   :  { %747 = vst [vmem:[%s1225_s3 + $0x8] sm:$0xff] %v743_v48 }

</bundles_post_ra>
